<compile_context>
chip_gen: v5e
topology: v5e:2x2
jax: 0.10.0
libtpu: 0.0.40
codegen_flags: <defaults>
</compile_context>

<pallas_src>
import functools

import jax
import jax.numpy as jnp
import numpy as np
from jax.experimental import pallas as pl
from jax.experimental.pallas import tpu as pltpu


def _cond_gru_kernel(ig_ref, peep_ref, h0_ref, wh_ref, bh_ref,
                     out_ref, h_scratch, *, hidden_size, chunk):
    """One grid step = `chunk` timesteps of the recurrence for one batch block.

    ig_ref   : [Bb, chunk, 3H] f32   precomputed x_t @ Wi + bi
    peep_ref : [Bb, 3H]        f32   precomputed ctx @ Wp + bp
    h0_ref   : [Bb, H]         f32   initial hidden state
    wh_ref   : [H, 3H]         f32/bf16
    bh_ref   : [1, 3H]         f32
    out_ref  : [Bb, chunk, H]  f32
    h_scratch: [Bb, H]         f32   hidden state carried across time chunks
    """
    H = hidden_size
    t = pl.program_id(1)          # time-chunk index (axis 1 is the serial axis)

    # Re-initialize the carried hidden state at the start of every batch block.
    @pl.when(t == 0)
    def _():
        h_scratch[...] = h0_ref[...].astype(jnp.float32)

    # Loop-invariant values, loaded once per grid step.
    peep = peep_ref[...]                                   # [Bb, 3H]
    p_r, p_i, p_n = peep[:, 0:H], peep[:, H:2 * H], peep[:, 2 * H:3 * H]
    wh = wh_ref[...]                                       # [H, 3H]
    bh = bh_ref[...]                                       # [1, 3H]

    h = h_scratch[...]                                     # [Bb, H] f32 carry
    for i in range(chunk):                                 # static unrolled loop
        ig = ig_ref[:, i, :]                               # [Bb, 3H]
        hg = jnp.dot(h.astype(wh.dtype), wh,
                     preferred_element_type=jnp.float32) + bh
        i_r, i_i, i_n = ig[:, 0:H], ig[:, H:2 * H], ig[:, 2 * H:3 * H]
        h_r, h_i, h_n = hg[:, 0:H], hg[:, H:2 * H], hg[:, 2 * H:3 * H]
        resetgate = jax.nn.sigmoid(i_r + h_r + p_r)
        inputgate = jax.nn.sigmoid(i_i + h_i + p_i)
        newgate = jnp.tanh(i_n + resetgate * h_n + p_n)
        h = newgate + inputgate * (h - newgate)
        out_ref[:, i, :] = h.astype(out_ref.dtype)

    h_scratch[...] = h


def conditional_gru(x, hidden, ctx, params, *, chunk=8, block_b=None,
                    weight_dtype=jnp.float32):
    """x: [B, T, D], hidden: [B, H], ctx: [B, H] -> (output [B, T, H], hidden [B, H])."""
    B, T, D = x.shape
    H = hidden.shape[1]
    wi, bi, wh, bh, wp, bp = params

    x = x.astype(jnp.float32)
    hidden = hidden.astype(jnp.float32)
    ctx = ctx.astype(jnp.float32)
    wd = weight_dtype

    # --- Hoisted out of the recurrence: one big MXU-friendly matmul each. ---
    # Input gates for all timesteps: [B, T, 3H] (f32 accumulation).
    ig = jnp.einsum('btd,dg->btg', x.astype(wd), wi.astype(wd),
                    preferred_element_type=jnp.float32) + bi.astype(jnp.float32)
    # Peephole gates on the context (constant over time): [B, 3H].
    peep = jnp.dot(ctx.astype(wd), wp.astype(wd),
                   preferred_element_type=jnp.float32) + bp.astype(jnp.float32)

    # --- Time chunking: pad T to a multiple of the chunk so the grid tiles evenly.
    chunk = max(1, min(chunk, T))
    if chunk < T and chunk % 8 != 0:        # (sublane alignment of the time block)
        chunk = ((chunk + 7) // 8) * 8
    chunk = min(chunk, T)
    t_pad = ((T + chunk - 1) // chunk) * chunk
    if t_pad != T:
        ig = jnp.pad(ig, ((0, 0), (0, t_pad - T), (0, 0)))
    n_t = t_pad // chunk

    # --- Batch blocking: split across the two TensorCores on v7x when possible.
    if block_b is None:
        block_b = B // 2 if (B % 16 == 0) else B
    assert B % block_b == 0
    n_b = B // block_b

    wh_c = wh.astype(wd)
    bh_c = bh.astype(jnp.float32)

    kernel = functools.partial(_cond_gru_kernel, hidden_size=H, chunk=chunk)

    out = pl.pallas_call(
        kernel,
        out_shape=jax.ShapeDtypeStruct((B, t_pad, H), jnp.float32),
        grid_spec=pltpu.PrefetchScalarGridSpec(
            num_scalar_prefetch=0,
            grid=(n_b, n_t),
            in_specs=[
                pl.BlockSpec((block_b, chunk, 3 * H), lambda b, t: (b, t, 0)),  # ig
                pl.BlockSpec((block_b, 3 * H), lambda b, t: (b, 0)),            # peep
                pl.BlockSpec((block_b, H), lambda b, t: (b, 0)),                # h0
                pl.BlockSpec((H, 3 * H), lambda b, t: (0, 0)),                  # Wh
                pl.BlockSpec((1, 3 * H), lambda b, t: (0, 0)),                  # bh
            ],
            out_specs=pl.BlockSpec((block_b, chunk, H), lambda b, t: (b, t, 0)),
            scratch_shapes=[
                pltpu.VMEM((block_b, H), jnp.float32),   # carried hidden state
            ],
        ),
        compiler_params=pltpu.CompilerParams(
            dimension_semantics=("parallel", "arbitrary")),
    )(ig, peep, hidden, wh_c, bh_c)

    out = out[:, :T, :]
    h_final = out[:, T - 1, :]
    return out, h_final


def init_params(key, input_size, hidden_size):
    """Deterministic nn.Linear-style init (uniform +-1/sqrt(fan_in)); weights pre-transposed."""
    ks = jax.random.split(key, 6)

    def lin(kw, kb, fan_in, fan_out):
        bound = 1.0 / np.sqrt(fan_in)
        w = jax.random.uniform(kw, (fan_in, fan_out), jnp.float32, -bound, bound)
        b = jax.random.uniform(kb, (1, fan_out), jnp.float32, -bound, bound)
        return w, b

    wi, bi = lin(ks[0], ks[1], input_size, 3 * hidden_size)
    wh, bh = lin(ks[2], ks[3], hidden_size, 3 * hidden_size)
    wp, bp = lin(ks[4], ks[5], hidden_size, 3 * hidden_size)
    return wi, bi, wh, bh, wp, bp


def conditional_gru_ref(x, hidden, ctx, params):
    """Pure-JAX reference (mirrors the PyTorch loop) for correctness checking."""
    wi, bi, wh, bh, wp, bp = params
    H = hidden.shape[1]
    peep = ctx @ wp + bp

    def step(h, x_t):
        ig = x_t @ wi + bi
        hg = h @ wh + bh
        i_r, i_i, i_n = ig[:, :H], ig[:, H:2 * H], ig[:, 2 * H:]
        h_r, h_i, h_n = hg[:, :H], hg[:, H:2 * H], hg[:, 2 * H:]
        p_r, p_i, p_n = peep[:, :H], peep[:, H:2 * H], peep[:, 2 * H:]
        r = jax.nn.sigmoid(i_r + h_r + p_r)
        z = jax.nn.sigmoid(i_i + h_i + p_i)
        n = jnp.tanh(i_n + r * h_n + p_n)
        hy = n + z * (h - n)
        return hy, hy

    h_fin, out = jax.lax.scan(step, hidden, jnp.transpose(x, (1, 0, 2)))
    return jnp.transpose(out, (1, 0, 2)), h_fin


if __name__ == "__main__":
    key = jax.random.PRNGKey(0)
    k_x, k_h, k_c, k_p = jax.random.split(key, 4)

    B, T, D, H = 2, 16, 16, 32
    x = jax.random.normal(k_x, (B, T, D), jnp.float32)
    h0 = jax.random.normal(k_h, (B, H), jnp.float32)
    ctx = jax.random.normal(k_c, (B, H), jnp.float32)
    params = init_params(k_p, D, H)

    # f32 run; T=16 with chunk=8 exercises the hidden-state carry across chunks.
    out, h_fin = conditional_gru(x, h0, ctx, params, chunk=8)
    out = jax.block_until_ready(out)
    h_fin = jax.block_until_ready(h_fin)
    out_ref, h_ref = conditional_gru_ref(x, h0, ctx, params)
    assert np.allclose(np.asarray(out), np.asarray(out_ref), atol=1e-5, rtol=1e-5)
    assert np.allclose(np.asarray(h_fin), np.asarray(h_ref), atol=1e-5, rtol=1e-5)

    # Ragged time (T=12 not a multiple of the chunk) exercises the zero-pad path.
    x12 = x[:, :12]
    out12, h12 = conditional_gru(x12, h0, ctx, params, chunk=8)
    out12 = jax.block_until_ready(out12)
    out12_ref, h12_ref = conditional_gru_ref(x12, h0, ctx, params)
    assert np.allclose(np.asarray(out12), np.asarray(out12_ref), atol=1e-5, rtol=1e-5)
    assert np.allclose(np.asarray(h12), np.asarray(h12_ref), atol=1e-5, rtol=1e-5)

    # bf16-weight fast path (halves resident Wh, MXU-native); looser tolerance.
    out_bf, _ = conditional_gru(x, h0, ctx, params, chunk=8,
                                weight_dtype=jnp.bfloat16)
    out_bf = jax.block_until_ready(out_bf)
    assert np.allclose(np.asarray(out_bf), np.asarray(out_ref), atol=5e-2, rtol=5e-2)

    print("KERNEL_OK")
</pallas_src>

<mosaic_0001>
module attributes {stable_mosaic.version = 11 : i64} {
  func.func @_cond_gru_kernel(%arg0: i32, %arg1: i32, %arg2: memref<2x8x96xf32, #tpu.memory_space<vmem>>, %arg3: memref<2x96xf32, #tpu.memory_space<vmem>>, %arg4: memref<2x32xf32, #tpu.memory_space<vmem>>, %arg5: memref<32x96xf32, #tpu.memory_space<vmem>>, %arg6: memref<1x96xf32, #tpu.memory_space<vmem>>, %arg7: memref<2x8x32xf32, #tpu.memory_space<vmem>>, %arg8: memref<2x32xf32, #tpu.memory_space<vmem>>) attributes {dimension_semantics = [#tpu.dimension_semantics<parallel>, #tpu.dimension_semantics<arbitrary>], iteration_bounds = array<i64: 1, 2>, scalar_prefetch = 0 : i64, scratch_operands = 1 : i64, tpu.core_type = #tpu.core_type<tc>, window_params = [{transform_indices = @transform_0, window_bounds = array<i64: 2, 8, 96>}, {transform_indices = @transform_1, window_bounds = array<i64: 2, 96>}, {transform_indices = @transform_2, window_bounds = array<i64: 2, 32>}, {pipeline_mode = #tpu.pipeline_mode<synchronous>, transform_indices = @transform_3, window_bounds = array<i64: 32, 96>}, {pipeline_mode = #tpu.pipeline_mode<synchronous>, transform_indices = @transform_4, window_bounds = array<i64: 1, 96>}, {transform_indices = @transform_5, window_bounds = array<i64: 2, 8, 32>}]} {
    %c0_i32 = arith.constant 0 : i32
    %0 = arith.cmpi eq, %arg1, %c0_i32 : i32
    %1 = arith.extui %0 : i1 to i32
    %c0_i32_0 = arith.constant 0 : i32
    %2 = arith.cmpi ne, %1, %c0_i32_0 : i32
    scf.if %2 {
      %c0_74 = arith.constant 0 : index
      %c0_75 = arith.constant 0 : index
      %291 = vector.load %arg4[%c0_74, %c0_75] : memref<2x32xf32, #tpu.memory_space<vmem>>, vector<2x32xf32>
      %c0_76 = arith.constant 0 : index
      %c0_77 = arith.constant 0 : index
      %292 = vector.load %arg8[%c0_76, %c0_77] : memref<2x32xf32, #tpu.memory_space<vmem>>, vector<2x32xf32>
      tpu.vector_store %arg8[%c0_76, %c0_77], %291 {strides = array<i32>} : memref<2x32xf32, #tpu.memory_space<vmem>>, vector<2x32xf32>,
    } else {
    }
    %c0 = arith.constant 0 : index
    %c0_1 = arith.constant 0 : index
    %3 = vector.load %arg3[%c0, %c0_1] : memref<2x96xf32, #tpu.memory_space<vmem>>, vector<2x96xf32>
    %4 = vector.extract_strided_slice %3 {offsets = [0, 0], sizes = [2, 32], strides = [1, 1]} : vector<2x96xf32> to vector<2x32xf32>
    %5 = vector.extract_strided_slice %3 {offsets = [0, 32], sizes = [2, 32], strides = [1, 1]} : vector<2x96xf32> to vector<2x32xf32>
    %6 = vector.extract_strided_slice %3 {offsets = [0, 64], sizes = [2, 32], strides = [1, 1]} : vector<2x96xf32> to vector<2x32xf32>
    %c0_2 = arith.constant 0 : index
    %c0_3 = arith.constant 0 : index
    %7 = vector.load %arg5[%c0_2, %c0_3] : memref<32x96xf32, #tpu.memory_space<vmem>>, vector<32x96xf32>
    %c0_4 = arith.constant 0 : index
    %c0_5 = arith.constant 0 : index
    %8 = vector.load %arg6[%c0_4, %c0_5] : memref<1x96xf32, #tpu.memory_space<vmem>>, vector<1x96xf32>
    %c0_6 = arith.constant 0 : index
    %c0_7 = arith.constant 0 : index
    %9 = vector.load %arg8[%c0_6, %c0_7] : memref<2x32xf32, #tpu.memory_space<vmem>>, vector<2x32xf32>
    %c0_8 = arith.constant 0 : index
    %c0_9 = arith.constant 0 : index
    %c0_10 = arith.constant 0 : index
    %10 = vector.load %arg2[%c0_8, %c0_9, %c0_10] : memref<2x8x96xf32, #tpu.memory_space<vmem>>, vector<2x1x96xf32>
    %11 = vector.shape_cast %10 : vector<2x1x96xf32> to vector<2x96xf32>
    %cst = arith.constant dense<0.000000e+00> : vector<2x96xf32>
    %12 = tpu.matmul %9, %7, %cst {dimension_numbers = #tpu.dot_dimension_numbers<[1], [0], [0], [1], [0, 0, 1, 1], [], []>} : vector<2x32xf32>, vector<32x96xf32>, vector<2x96xf32> -> vector<2x96xf32>
    %13 = vector.broadcast %8 : vector<1x96xf32> to vector<2x96xf32>
    %14 = arith.addf %12, %13 : vector<2x96xf32>
    %15 = vector.extract_strided_slice %11 {offsets = [0, 0], sizes = [2, 32], strides = [1, 1]} : vector<2x96xf32> to vector<2x32xf32>
    %16 = vector.extract_strided_slice %11 {offsets = [0, 32], sizes = [2, 32], strides = [1, 1]} : vector<2x96xf32> to vector<2x32xf32>
    %17 = vector.extract_strided_slice %11 {offsets = [0, 64], sizes = [2, 32], strides = [1, 1]} : vector<2x96xf32> to vector<2x32xf32>
    %18 = vector.extract_strided_slice %14 {offsets = [0, 0], sizes = [2, 32], strides = [1, 1]} : vector<2x96xf32> to vector<2x32xf32>
    %19 = vector.extract_strided_slice %14 {offsets = [0, 32], sizes = [2, 32], strides = [1, 1]} : vector<2x96xf32> to vector<2x32xf32>
    %20 = vector.extract_strided_slice %14 {offsets = [0, 64], sizes = [2, 32], strides = [1, 1]} : vector<2x96xf32> to vector<2x32xf32>
    %21 = arith.addf %15, %18 : vector<2x32xf32>
    %22 = arith.addf %21, %4 : vector<2x32xf32>
    %23 = arith.negf %22 : vector<2x32xf32>
    %24 = math.exp %23 : vector<2x32xf32>
    %cst_11 = arith.constant 1.000000e+00 : f32
    %25 = vector.broadcast %cst_11 : f32 to vector<2x32xf32>
    %26 = arith.addf %25, %24 : vector<2x32xf32>
    %27 = arith.divf %25, %26 : vector<2x32xf32>
    %28 = arith.addf %16, %19 : vector<2x32xf32>
    %29 = arith.addf %28, %5 : vector<2x32xf32>
    %30 = arith.negf %29 : vector<2x32xf32>
    %31 = math.exp %30 : vector<2x32xf32>
    %cst_12 = arith.constant 1.000000e+00 : f32
    %32 = vector.broadcast %cst_12 : f32 to vector<2x32xf32>
    %33 = arith.addf %32, %31 : vector<2x32xf32>
    %34 = arith.divf %32, %33 : vector<2x32xf32>
    %35 = arith.mulf %27, %20 : vector<2x32xf32>
    %36 = arith.addf %17, %35 : vector<2x32xf32>
    %37 = arith.addf %36, %6 : vector<2x32xf32>
    %38 = math.tanh %37 : vector<2x32xf32>
    %39 = arith.subf %9, %38 : vector<2x32xf32>
    %40 = arith.mulf %34, %39 : vector<2x32xf32>
    %41 = arith.addf %38, %40 : vector<2x32xf32>
    %c0_13 = arith.constant 0 : index
    %c0_14 = arith.constant 0 : index
    %c0_15 = arith.constant 0 : index
    %42 = vector.load %arg7[%c0_13, %c0_14, %c0_15] : memref<2x8x32xf32, #tpu.memory_space<vmem>>, vector<2x1x32xf32>
    %43 = vector.shape_cast %42 : vector<2x1x32xf32> to vector<2x32xf32>
    %44 = vector.shape_cast %41 : vector<2x32xf32> to vector<2x1x32xf32>
    tpu.vector_store %arg7[%c0_13, %c0_14, %c0_15], %44 {strides = array<i32>} : memref<2x8x32xf32, #tpu.memory_space<vmem>>, vector<2x1x32xf32>,
    %c0_16 = arith.constant 0 : index
    %c1 = arith.constant 1 : index
    %c0_17 = arith.constant 0 : index
    %45 = vector.load %arg2[%c0_16, %c1, %c0_17] : memref<2x8x96xf32, #tpu.memory_space<vmem>>, vector<2x1x96xf32>
    %46 = vector.shape_cast %45 : vector<2x1x96xf32> to vector<2x96xf32>
    %cst_18 = arith.constant dense<0.000000e+00> : vector<2x96xf32>
    %47 = tpu.matmul %41, %7, %cst_18 {dimension_numbers = #tpu.dot_dimension_numbers<[1], [0], [0], [1], [0, 0, 1, 1], [], []>} : vector<2x32xf32>, vector<32x96xf32>, vector<2x96xf32> -> vector<2x96xf32>
    %48 = vector.broadcast %8 : vector<1x96xf32> to vector<2x96xf32>
    %49 = arith.addf %47, %48 : vector<2x96xf32>
    %50 = vector.extract_strided_slice %46 {offsets = [0, 0], sizes = [2, 32], strides = [1, 1]} : vector<2x96xf32> to vector<2x32xf32>
    %51 = vector.extract_strided_slice %46 {offsets = [0, 32], sizes = [2, 32], strides = [1, 1]} : vector<2x96xf32> to vector<2x32xf32>
    %52 = vector.extract_strided_slice %46 {offsets = [0, 64], sizes = [2, 32], strides = [1, 1]} : vector<2x96xf32> to vector<2x32xf32>
    %53 = vector.extract_strided_slice %49 {offsets = [0, 0], sizes = [2, 32], strides = [1, 1]} : vector<2x96xf32> to vector<2x32xf32>
    %54 = vector.extract_strided_slice %49 {offsets = [0, 32], sizes = [2, 32], strides = [1, 1]} : vector<2x96xf32> to vector<2x32xf32>
    %55 = vector.extract_strided_slice %49 {offsets = [0, 64], sizes = [2, 32], strides = [1, 1]} : vector<2x96xf32> to vector<2x32xf32>
    %56 = arith.addf %50, %53 : vector<2x32xf32>
    %57 = arith.addf %56, %4 : vector<2x32xf32>
    %58 = arith.negf %57 : vector<2x32xf32>
    %59 = math.exp %58 : vector<2x32xf32>
    %cst_19 = arith.constant 1.000000e+00 : f32
    %60 = vector.broadcast %cst_19 : f32 to vector<2x32xf32>
    %61 = arith.addf %60, %59 : vector<2x32xf32>
    %62 = arith.divf %60, %61 : vector<2x32xf32>
    %63 = arith.addf %51, %54 : vector<2x32xf32>
    %64 = arith.addf %63, %5 : vector<2x32xf32>
    %65 = arith.negf %64 : vector<2x32xf32>
    %66 = math.exp %65 : vector<2x32xf32>
    %cst_20 = arith.constant 1.000000e+00 : f32
    %67 = vector.broadcast %cst_20 : f32 to vector<2x32xf32>
    %68 = arith.addf %67, %66 : vector<2x32xf32>
    %69 = arith.divf %67, %68 : vector<2x32xf32>
    %70 = arith.mulf %62, %55 : vector<2x32xf32>
    %71 = arith.addf %52, %70 : vector<2x32xf32>
    %72 = arith.addf %71, %6 : vector<2x32xf32>
    %73 = math.tanh %72 : vector<2x32xf32>
    %74 = arith.subf %41, %73 : vector<2x32xf32>
    %75 = arith.mulf %69, %74 : vector<2x32xf32>
    %76 = arith.addf %73, %75 : vector<2x32xf32>
    %c0_21 = arith.constant 0 : index
    %c1_22 = arith.constant 1 : index
    %c0_23 = arith.constant 0 : index
    %77 = vector.load %arg7[%c0_21, %c1_22, %c0_23] : memref<2x8x32xf32, #tpu.memory_space<vmem>>, vector<2x1x32xf32>
    %78 = vector.shape_cast %77 : vector<2x1x32xf32> to vector<2x32xf32>
    %79 = vector.shape_cast %76 : vector<2x32xf32> to vector<2x1x32xf32>
    tpu.vector_store %arg7[%c0_21, %c1_22, %c0_23], %79 {strides = array<i32>} : memref<2x8x32xf32, #tpu.memory_space<vmem>>, vector<2x1x32xf32>,
    %c0_24 = arith.constant 0 : index
    %c2 = arith.constant 2 : index
    %c0_25 = arith.constant 0 : index
    %80 = vector.load %arg2[%c0_24, %c2, %c0_25] : memref<2x8x96xf32, #tpu.memory_space<vmem>>, vector<2x1x96xf32>
    %81 = vector.shape_cast %80 : vector<2x1x96xf32> to vector<2x96xf32>
    %cst_26 = arith.constant dense<0.000000e+00> : vector<2x96xf32>
    %82 = tpu.matmul %76, %7, %cst_26 {dimension_numbers = #tpu.dot_dimension_numbers<[1], [0], [0], [1], [0, 0, 1, 1], [], []>} : vector<2x32xf32>, vector<32x96xf32>, vector<2x96xf32> -> vector<2x96xf32>
    %83 = vector.broadcast %8 : vector<1x96xf32> to vector<2x96xf32>
    %84 = arith.addf %82, %83 : vector<2x96xf32>
    %85 = vector.extract_strided_slice %81 {offsets = [0, 0], sizes = [2, 32], strides = [1, 1]} : vector<2x96xf32> to vector<2x32xf32>
    %86 = vector.extract_strided_slice %81 {offsets = [0, 32], sizes = [2, 32], strides = [1, 1]} : vector<2x96xf32> to vector<2x32xf32>
    %87 = vector.extract_strided_slice %81 {offsets = [0, 64], sizes = [2, 32], strides = [1, 1]} : vector<2x96xf32> to vector<2x32xf32>
    %88 = vector.extract_strided_slice %84 {offsets = [0, 0], sizes = [2, 32], strides = [1, 1]} : vector<2x96xf32> to vector<2x32xf32>
    %89 = vector.extract_strided_slice %84 {offsets = [0, 32], sizes = [2, 32], strides = [1, 1]} : vector<2x96xf32> to vector<2x32xf32>
    %90 = vector.extract_strided_slice %84 {offsets = [0, 64], sizes = [2, 32], strides = [1, 1]} : vector<2x96xf32> to vector<2x32xf32>
    %91 = arith.addf %85, %88 : vector<2x32xf32>
    %92 = arith.addf %91, %4 : vector<2x32xf32>
    %93 = arith.negf %92 : vector<2x32xf32>
    %94 = math.exp %93 : vector<2x32xf32>
    %cst_27 = arith.constant 1.000000e+00 : f32
    %95 = vector.broadcast %cst_27 : f32 to vector<2x32xf32>
    %96 = arith.addf %95, %94 : vector<2x32xf32>
    %97 = arith.divf %95, %96 : vector<2x32xf32>
    %98 = arith.addf %86, %89 : vector<2x32xf32>
    %99 = arith.addf %98, %5 : vector<2x32xf32>
    %100 = arith.negf %99 : vector<2x32xf32>
    %101 = math.exp %100 : vector<2x32xf32>
    %cst_28 = arith.constant 1.000000e+00 : f32
    %102 = vector.broadcast %cst_28 : f32 to vector<2x32xf32>
    %103 = arith.addf %102, %101 : vector<2x32xf32>
    %104 = arith.divf %102, %103 : vector<2x32xf32>
    %105 = arith.mulf %97, %90 : vector<2x32xf32>
    %106 = arith.addf %87, %105 : vector<2x32xf32>
    %107 = arith.addf %106, %6 : vector<2x32xf32>
    %108 = math.tanh %107 : vector<2x32xf32>
    %109 = arith.subf %76, %108 : vector<2x32xf32>
    %110 = arith.mulf %104, %109 : vector<2x32xf32>
    %111 = arith.addf %108, %110 : vector<2x32xf32>
    %c0_29 = arith.constant 0 : index
    %c2_30 = arith.constant 2 : index
    %c0_31 = arith.constant 0 : index
    %112 = vector.load %arg7[%c0_29, %c2_30, %c0_31] : memref<2x8x32xf32, #tpu.memory_space<vmem>>, vector<2x1x32xf32>
    %113 = vector.shape_cast %112 : vector<2x1x32xf32> to vector<2x32xf32>
    %114 = vector.shape_cast %111 : vector<2x32xf32> to vector<2x1x32xf32>
    tpu.vector_store %arg7[%c0_29, %c2_30, %c0_31], %114 {strides = array<i32>} : memref<2x8x32xf32, #tpu.memory_space<vmem>>, vector<2x1x32xf32>,
    %c0_32 = arith.constant 0 : index
    %c3 = arith.constant 3 : index
    %c0_33 = arith.constant 0 : index
    %115 = vector.load %arg2[%c0_32, %c3, %c0_33] : memref<2x8x96xf32, #tpu.memory_space<vmem>>, vector<2x1x96xf32>
    %116 = vector.shape_cast %115 : vector<2x1x96xf32> to vector<2x96xf32>
    %cst_34 = arith.constant dense<0.000000e+00> : vector<2x96xf32>
    %117 = tpu.matmul %111, %7, %cst_34 {dimension_numbers = #tpu.dot_dimension_numbers<[1], [0], [0], [1], [0, 0, 1, 1], [], []>} : vector<2x32xf32>, vector<32x96xf32>, vector<2x96xf32> -> vector<2x96xf32>
    %118 = vector.broadcast %8 : vector<1x96xf32> to vector<2x96xf32>
    %119 = arith.addf %117, %118 : vector<2x96xf32>
    %120 = vector.extract_strided_slice %116 {offsets = [0, 0], sizes = [2, 32], strides = [1, 1]} : vector<2x96xf32> to vector<2x32xf32>
    %121 = vector.extract_strided_slice %116 {offsets = [0, 32], sizes = [2, 32], strides = [1, 1]} : vector<2x96xf32> to vector<2x32xf32>
    %122 = vector.extract_strided_slice %116 {offsets = [0, 64], sizes = [2, 32], strides = [1, 1]} : vector<2x96xf32> to vector<2x32xf32>
    %123 = vector.extract_strided_slice %119 {offsets = [0, 0], sizes = [2, 32], strides = [1, 1]} : vector<2x96xf32> to vector<2x32xf32>
    %124 = vector.extract_strided_slice %119 {offsets = [0, 32], sizes = [2, 32], strides = [1, 1]} : vector<2x96xf32> to vector<2x32xf32>
    %125 = vector.extract_strided_slice %119 {offsets = [0, 64], sizes = [2, 32], strides = [1, 1]} : vector<2x96xf32> to vector<2x32xf32>
    %126 = arith.addf %120, %123 : vector<2x32xf32>
    %127 = arith.addf %126, %4 : vector<2x32xf32>
    %128 = arith.negf %127 : vector<2x32xf32>
    %129 = math.exp %128 : vector<2x32xf32>
    %cst_35 = arith.constant 1.000000e+00 : f32
    %130 = vector.broadcast %cst_35 : f32 to vector<2x32xf32>
    %131 = arith.addf %130, %129 : vector<2x32xf32>
    %132 = arith.divf %130, %131 : vector<2x32xf32>
    %133 = arith.addf %121, %124 : vector<2x32xf32>
    %134 = arith.addf %133, %5 : vector<2x32xf32>
    %135 = arith.negf %134 : vector<2x32xf32>
    %136 = math.exp %135 : vector<2x32xf32>
    %cst_36 = arith.constant 1.000000e+00 : f32
    %137 = vector.broadcast %cst_36 : f32 to vector<2x32xf32>
    %138 = arith.addf %137, %136 : vector<2x32xf32>
    %139 = arith.divf %137, %138 : vector<2x32xf32>
    %140 = arith.mulf %132, %125 : vector<2x32xf32>
    %141 = arith.addf %122, %140 : vector<2x32xf32>
    %142 = arith.addf %141, %6 : vector<2x32xf32>
    %143 = math.tanh %142 : vector<2x32xf32>
    %144 = arith.subf %111, %143 : vector<2x32xf32>
    %145 = arith.mulf %139, %144 : vector<2x32xf32>
    %146 = arith.addf %143, %145 : vector<2x32xf32>
    %c0_37 = arith.constant 0 : index
    %c3_38 = arith.constant 3 : index
    %c0_39 = arith.constant 0 : index
    %147 = vector.load %arg7[%c0_37, %c3_38, %c0_39] : memref<2x8x32xf32, #tpu.memory_space<vmem>>, vector<2x1x32xf32>
    %148 = vector.shape_cast %147 : vector<2x1x32xf32> to vector<2x32xf32>
    %149 = vector.shape_cast %146 : vector<2x32xf32> to vector<2x1x32xf32>
    tpu.vector_store %arg7[%c0_37, %c3_38, %c0_39], %149 {strides = array<i32>} : memref<2x8x32xf32, #tpu.memory_space<vmem>>, vector<2x1x32xf32>,
    %c0_40 = arith.constant 0 : index
    %c4 = arith.constant 4 : index
    %c0_41 = arith.constant 0 : index
    %150 = vector.load %arg2[%c0_40, %c4, %c0_41] : memref<2x8x96xf32, #tpu.memory_space<vmem>>, vector<2x1x96xf32>
    %151 = vector.shape_cast %150 : vector<2x1x96xf32> to vector<2x96xf32>
    %cst_42 = arith.constant dense<0.000000e+00> : vector<2x96xf32>
    %152 = tpu.matmul %146, %7, %cst_42 {dimension_numbers = #tpu.dot_dimension_numbers<[1], [0], [0], [1], [0, 0, 1, 1], [], []>} : vector<2x32xf32>, vector<32x96xf32>, vector<2x96xf32> -> vector<2x96xf32>
    %153 = vector.broadcast %8 : vector<1x96xf32> to vector<2x96xf32>
    %154 = arith.addf %152, %153 : vector<2x96xf32>
    %155 = vector.extract_strided_slice %151 {offsets = [0, 0], sizes = [2, 32], strides = [1, 1]} : vector<2x96xf32> to vector<2x32xf32>
    %156 = vector.extract_strided_slice %151 {offsets = [0, 32], sizes = [2, 32], strides = [1, 1]} : vector<2x96xf32> to vector<2x32xf32>
    %157 = vector.extract_strided_slice %151 {offsets = [0, 64], sizes = [2, 32], strides = [1, 1]} : vector<2x96xf32> to vector<2x32xf32>
    %158 = vector.extract_strided_slice %154 {offsets = [0, 0], sizes = [2, 32], strides = [1, 1]} : vector<2x96xf32> to vector<2x32xf32>
    %159 = vector.extract_strided_slice %154 {offsets = [0, 32], sizes = [2, 32], strides = [1, 1]} : vector<2x96xf32> to vector<2x32xf32>
    %160 = vector.extract_strided_slice %154 {offsets = [0, 64], sizes = [2, 32], strides = [1, 1]} : vector<2x96xf32> to vector<2x32xf32>
    %161 = arith.addf %155, %158 : vector<2x32xf32>
    %162 = arith.addf %161, %4 : vector<2x32xf32>
    %163 = arith.negf %162 : vector<2x32xf32>
    %164 = math.exp %163 : vector<2x32xf32>
    %cst_43 = arith.constant 1.000000e+00 : f32
    %165 = vector.broadcast %cst_43 : f32 to vector<2x32xf32>
    %166 = arith.addf %165, %164 : vector<2x32xf32>
    %167 = arith.divf %165, %166 : vector<2x32xf32>
    %168 = arith.addf %156, %159 : vector<2x32xf32>
    %169 = arith.addf %168, %5 : vector<2x32xf32>
    %170 = arith.negf %169 : vector<2x32xf32>
    %171 = math.exp %170 : vector<2x32xf32>
    %cst_44 = arith.constant 1.000000e+00 : f32
    %172 = vector.broadcast %cst_44 : f32 to vector<2x32xf32>
    %173 = arith.addf %172, %171 : vector<2x32xf32>
    %174 = arith.divf %172, %173 : vector<2x32xf32>
    %175 = arith.mulf %167, %160 : vector<2x32xf32>
    %176 = arith.addf %157, %175 : vector<2x32xf32>
    %177 = arith.addf %176, %6 : vector<2x32xf32>
    %178 = math.tanh %177 : vector<2x32xf32>
    %179 = arith.subf %146, %178 : vector<2x32xf32>
    %180 = arith.mulf %174, %179 : vector<2x32xf32>
    %181 = arith.addf %178, %180 : vector<2x32xf32>
    %c0_45 = arith.constant 0 : index
    %c4_46 = arith.constant 4 : index
    %c0_47 = arith.constant 0 : index
    %182 = vector.load %arg7[%c0_45, %c4_46, %c0_47] : memref<2x8x32xf32, #tpu.memory_space<vmem>>, vector<2x1x32xf32>
    %183 = vector.shape_cast %182 : vector<2x1x32xf32> to vector<2x32xf32>
    %184 = vector.shape_cast %181 : vector<2x32xf32> to vector<2x1x32xf32>
    tpu.vector_store %arg7[%c0_45, %c4_46, %c0_47], %184 {strides = array<i32>} : memref<2x8x32xf32, #tpu.memory_space<vmem>>, vector<2x1x32xf32>,
    %c0_48 = arith.constant 0 : index
    %c5 = arith.constant 5 : index
    %c0_49 = arith.constant 0 : index
    %185 = vector.load %arg2[%c0_48, %c5, %c0_49] : memref<2x8x96xf32, #tpu.memory_space<vmem>>, vector<2x1x96xf32>
    %186 = vector.shape_cast %185 : vector<2x1x96xf32> to vector<2x96xf32>
    %cst_50 = arith.constant dense<0.000000e+00> : vector<2x96xf32>
    %187 = tpu.matmul %181, %7, %cst_50 {dimension_numbers = #tpu.dot_dimension_numbers<[1], [0], [0], [1], [0, 0, 1, 1], [], []>} : vector<2x32xf32>, vector<32x96xf32>, vector<2x96xf32> -> vector<2x96xf32>
    %188 = vector.broadcast %8 : vector<1x96xf32> to vector<2x96xf32>
    %189 = arith.addf %187, %188 : vector<2x96xf32>
    %190 = vector.extract_strided_slice %186 {offsets = [0, 0], sizes = [2, 32], strides = [1, 1]} : vector<2x96xf32> to vector<2x32xf32>
    %191 = vector.extract_strided_slice %186 {offsets = [0, 32], sizes = [2, 32], strides = [1, 1]} : vector<2x96xf32> to vector<2x32xf32>
    %192 = vector.extract_strided_slice %186 {offsets = [0, 64], sizes = [2, 32], strides = [1, 1]} : vector<2x96xf32> to vector<2x32xf32>
    %193 = vector.extract_strided_slice %189 {offsets = [0, 0], sizes = [2, 32], strides = [1, 1]} : vector<2x96xf32> to vector<2x32xf32>
    %194 = vector.extract_strided_slice %189 {offsets = [0, 32], sizes = [2, 32], strides = [1, 1]} : vector<2x96xf32> to vector<2x32xf32>
    %195 = vector.extract_strided_slice %189 {offsets = [0, 64], sizes = [2, 32], strides = [1, 1]} : vector<2x96xf32> to vector<2x32xf32>
    %196 = arith.addf %190, %193 : vector<2x32xf32>
    %197 = arith.addf %196, %4 : vector<2x32xf32>
    %198 = arith.negf %197 : vector<2x32xf32>
    %199 = math.exp %198 : vector<2x32xf32>
    %cst_51 = arith.constant 1.000000e+00 : f32
    %200 = vector.broadcast %cst_51 : f32 to vector<2x32xf32>
    %201 = arith.addf %200, %199 : vector<2x32xf32>
    %202 = arith.divf %200, %201 : vector<2x32xf32>
    %203 = arith.addf %191, %194 : vector<2x32xf32>
    %204 = arith.addf %203, %5 : vector<2x32xf32>
    %205 = arith.negf %204 : vector<2x32xf32>
    %206 = math.exp %205 : vector<2x32xf32>
    %cst_52 = arith.constant 1.000000e+00 : f32
    %207 = vector.broadcast %cst_52 : f32 to vector<2x32xf32>
    %208 = arith.addf %207, %206 : vector<2x32xf32>
    %209 = arith.divf %207, %208 : vector<2x32xf32>
    %210 = arith.mulf %202, %195 : vector<2x32xf32>
    %211 = arith.addf %192, %210 : vector<2x32xf32>
    %212 = arith.addf %211, %6 : vector<2x32xf32>
    %213 = math.tanh %212 : vector<2x32xf32>
    %214 = arith.subf %181, %213 : vector<2x32xf32>
    %215 = arith.mulf %209, %214 : vector<2x32xf32>
    %216 = arith.addf %213, %215 : vector<2x32xf32>
    %c0_53 = arith.constant 0 : index
    %c5_54 = arith.constant 5 : index
    %c0_55 = arith.constant 0 : index
    %217 = vector.load %arg7[%c0_53, %c5_54, %c0_55] : memref<2x8x32xf32, #tpu.memory_space<vmem>>, vector<2x1x32xf32>
    %218 = vector.shape_cast %217 : vector<2x1x32xf32> to vector<2x32xf32>
    %219 = vector.shape_cast %216 : vector<2x32xf32> to vector<2x1x32xf32>
    tpu.vector_store %arg7[%c0_53, %c5_54, %c0_55], %219 {strides = array<i32>} : memref<2x8x32xf32, #tpu.memory_space<vmem>>, vector<2x1x32xf32>,
    %c0_56 = arith.constant 0 : index
    %c6 = arith.constant 6 : index
    %c0_57 = arith.constant 0 : index
    %220 = vector.load %arg2[%c0_56, %c6, %c0_57] : memref<2x8x96xf32, #tpu.memory_space<vmem>>, vector<2x1x96xf32>
    %221 = vector.shape_cast %220 : vector<2x1x96xf32> to vector<2x96xf32>
    %cst_58 = arith.constant dense<0.000000e+00> : vector<2x96xf32>
    %222 = tpu.matmul %216, %7, %cst_58 {dimension_numbers = #tpu.dot_dimension_numbers<[1], [0], [0], [1], [0, 0, 1, 1], [], []>} : vector<2x32xf32>, vector<32x96xf32>, vector<2x96xf32> -> vector<2x96xf32>
    %223 = vector.broadcast %8 : vector<1x96xf32> to vector<2x96xf32>
    %224 = arith.addf %222, %223 : vector<2x96xf32>
    %225 = vector.extract_strided_slice %221 {offsets = [0, 0], sizes = [2, 32], strides = [1, 1]} : vector<2x96xf32> to vector<2x32xf32>
    %226 = vector.extract_strided_slice %221 {offsets = [0, 32], sizes = [2, 32], strides = [1, 1]} : vector<2x96xf32> to vector<2x32xf32>
    %227 = vector.extract_strided_slice %221 {offsets = [0, 64], sizes = [2, 32], strides = [1, 1]} : vector<2x96xf32> to vector<2x32xf32>
    %228 = vector.extract_strided_slice %224 {offsets = [0, 0], sizes = [2, 32], strides = [1, 1]} : vector<2x96xf32> to vector<2x32xf32>
    %229 = vector.extract_strided_slice %224 {offsets = [0, 32], sizes = [2, 32], strides = [1, 1]} : vector<2x96xf32> to vector<2x32xf32>
    %230 = vector.extract_strided_slice %224 {offsets = [0, 64], sizes = [2, 32], strides = [1, 1]} : vector<2x96xf32> to vector<2x32xf32>
    %231 = arith.addf %225, %228 : vector<2x32xf32>
    %232 = arith.addf %231, %4 : vector<2x32xf32>
    %233 = arith.negf %232 : vector<2x32xf32>
    %234 = math.exp %233 : vector<2x32xf32>
    %cst_59 = arith.constant 1.000000e+00 : f32
    %235 = vector.broadcast %cst_59 : f32 to vector<2x32xf32>
    %236 = arith.addf %235, %234 : vector<2x32xf32>
    %237 = arith.divf %235, %236 : vector<2x32xf32>
    %238 = arith.addf %226, %229 : vector<2x32xf32>
    %239 = arith.addf %238, %5 : vector<2x32xf32>
    %240 = arith.negf %239 : vector<2x32xf32>
    %241 = math.exp %240 : vector<2x32xf32>
    %cst_60 = arith.constant 1.000000e+00 : f32
    %242 = vector.broadcast %cst_60 : f32 to vector<2x32xf32>
    %243 = arith.addf %242, %241 : vector<2x32xf32>
    %244 = arith.divf %242, %243 : vector<2x32xf32>
    %245 = arith.mulf %237, %230 : vector<2x32xf32>
    %246 = arith.addf %227, %245 : vector<2x32xf32>
    %247 = arith.addf %246, %6 : vector<2x32xf32>
    %248 = math.tanh %247 : vector<2x32xf32>
    %249 = arith.subf %216, %248 : vector<2x32xf32>
    %250 = arith.mulf %244, %249 : vector<2x32xf32>
    %251 = arith.addf %248, %250 : vector<2x32xf32>
    %c0_61 = arith.constant 0 : index
    %c6_62 = arith.constant 6 : index
    %c0_63 = arith.constant 0 : index
    %252 = vector.load %arg7[%c0_61, %c6_62, %c0_63] : memref<2x8x32xf32, #tpu.memory_space<vmem>>, vector<2x1x32xf32>
    %253 = vector.shape_cast %252 : vector<2x1x32xf32> to vector<2x32xf32>
    %254 = vector.shape_cast %251 : vector<2x32xf32> to vector<2x1x32xf32>
    tpu.vector_store %arg7[%c0_61, %c6_62, %c0_63], %254 {strides = array<i32>} : memref<2x8x32xf32, #tpu.memory_space<vmem>>, vector<2x1x32xf32>,
    %c0_64 = arith.constant 0 : index
    %c7 = arith.constant 7 : index
    %c0_65 = arith.constant 0 : index
    %255 = vector.load %arg2[%c0_64, %c7, %c0_65] : memref<2x8x96xf32, #tpu.memory_space<vmem>>, vector<2x1x96xf32>
    %256 = vector.shape_cast %255 : vector<2x1x96xf32> to vector<2x96xf32>
    %cst_66 = arith.constant dense<0.000000e+00> : vector<2x96xf32>
    %257 = tpu.matmul %251, %7, %cst_66 {dimension_numbers = #tpu.dot_dimension_numbers<[1], [0], [0], [1], [0, 0, 1, 1], [], []>} : vector<2x32xf32>, vector<32x96xf32>, vector<2x96xf32> -> vector<2x96xf32>
    %258 = vector.broadcast %8 : vector<1x96xf32> to vector<2x96xf32>
    %259 = arith.addf %257, %258 : vector<2x96xf32>
    %260 = vector.extract_strided_slice %256 {offsets = [0, 0], sizes = [2, 32], strides = [1, 1]} : vector<2x96xf32> to vector<2x32xf32>
    %261 = vector.extract_strided_slice %256 {offsets = [0, 32], sizes = [2, 32], strides = [1, 1]} : vector<2x96xf32> to vector<2x32xf32>
    %262 = vector.extract_strided_slice %256 {offsets = [0, 64], sizes = [2, 32], strides = [1, 1]} : vector<2x96xf32> to vector<2x32xf32>
    %263 = vector.extract_strided_slice %259 {offsets = [0, 0], sizes = [2, 32], strides = [1, 1]} : vector<2x96xf32> to vector<2x32xf32>
    %264 = vector.extract_strided_slice %259 {offsets = [0, 32], sizes = [2, 32], strides = [1, 1]} : vector<2x96xf32> to vector<2x32xf32>
    %265 = vector.extract_strided_slice %259 {offsets = [0, 64], sizes = [2, 32], strides = [1, 1]} : vector<2x96xf32> to vector<2x32xf32>
    %266 = arith.addf %260, %263 : vector<2x32xf32>
    %267 = arith.addf %266, %4 : vector<2x32xf32>
    %268 = arith.negf %267 : vector<2x32xf32>
    %269 = math.exp %268 : vector<2x32xf32>
    %cst_67 = arith.constant 1.000000e+00 : f32
    %270 = vector.broadcast %cst_67 : f32 to vector<2x32xf32>
    %271 = arith.addf %270, %269 : vector<2x32xf32>
    %272 = arith.divf %270, %271 : vector<2x32xf32>
    %273 = arith.addf %261, %264 : vector<2x32xf32>
    %274 = arith.addf %273, %5 : vector<2x32xf32>
    %275 = arith.negf %274 : vector<2x32xf32>
    %276 = math.exp %275 : vector<2x32xf32>
    %cst_68 = arith.constant 1.000000e+00 : f32
    %277 = vector.broadcast %cst_68 : f32 to vector<2x32xf32>
    %278 = arith.addf %277, %276 : vector<2x32xf32>
    %279 = arith.divf %277, %278 : vector<2x32xf32>
    %280 = arith.mulf %272, %265 : vector<2x32xf32>
    %281 = arith.addf %262, %280 : vector<2x32xf32>
    %282 = arith.addf %281, %6 : vector<2x32xf32>
    %283 = math.tanh %282 : vector<2x32xf32>
    %284 = arith.subf %251, %283 : vector<2x32xf32>
    %285 = arith.mulf %279, %284 : vector<2x32xf32>
    %286 = arith.addf %283, %285 : vector<2x32xf32>
    %c0_69 = arith.constant 0 : index
    %c7_70 = arith.constant 7 : index
    %c0_71 = arith.constant 0 : index
    %287 = vector.load %arg7[%c0_69, %c7_70, %c0_71] : memref<2x8x32xf32, #tpu.memory_space<vmem>>, vector<2x1x32xf32>
    %288 = vector.shape_cast %287 : vector<2x1x32xf32> to vector<2x32xf32>
    %289 = vector.shape_cast %286 : vector<2x32xf32> to vector<2x1x32xf32>
    tpu.vector_store %arg7[%c0_69, %c7_70, %c0_71], %289 {strides = array<i32>} : memref<2x8x32xf32, #tpu.memory_space<vmem>>, vector<2x1x32xf32>,
    %c0_72 = arith.constant 0 : index
    %c0_73 = arith.constant 0 : index
    %290 = vector.load %arg8[%c0_72, %c0_73] : memref<2x32xf32, #tpu.memory_space<vmem>>, vector<2x32xf32>
    tpu.vector_store %arg8[%c0_72, %c0_73], %286 {strides = array<i32>} : memref<2x32xf32, #tpu.memory_space<vmem>>, vector<2x32xf32>,
    return
  }
  func.func @transform_0(%arg0: i32, %arg1: i32) -> (i32, i32, i32) {
    %c0_i32 = arith.constant 0 : i32
    %c0_i32_0 = arith.constant 0 : i32
    return %arg0, %arg1, %c0_i32 : i32, i32, i32
  }
  func.func @transform_1(%arg0: i32, %arg1: i32) -> (i32, i32) {
    %c0_i32 = arith.constant 0 : i32
    %c0_i32_0 = arith.constant 0 : i32
    return %arg0, %c0_i32 : i32, i32
  }
  func.func @transform_2(%arg0: i32, %arg1: i32) -> (i32, i32) {
    %c0_i32 = arith.constant 0 : i32
    %c0_i32_0 = arith.constant 0 : i32
    return %arg0, %c0_i32 : i32, i32
  }
  func.func @transform_3(%arg0: i32, %arg1: i32) -> (i32, i32) {
    %c0_i32 = arith.constant 0 : i32
    %c0_i32_0 = arith.constant 0 : i32
    %c0_i32_1 = arith.constant 0 : i32
    return %c0_i32, %c0_i32_0 : i32, i32
  }
  func.func @transform_4(%arg0: i32, %arg1: i32) -> (i32, i32) {
    %c0_i32 = arith.constant 0 : i32
    %c0_i32_0 = arith.constant 0 : i32
    %c0_i32_1 = arith.constant 0 : i32
    return %c0_i32, %c0_i32_0 : i32, i32
  }
  func.func @transform_5(%arg0: i32, %arg1: i32) -> (i32, i32, i32) {
    %c0_i32 = arith.constant 0 : i32
    %c0_i32_0 = arith.constant 0 : i32
    return %arg0, %arg1, %c0_i32 : i32, i32, i32
  }
}

</mosaic_0001>

<bundles_post_ra>
// kernel: tpu_custom_call.1
= control target key start
LH: loop header
LB: loop body
LE: loop exit
PB: predicated region body
PF: predicated region fallthrough
CT: control target
= control target key end

     0   :  { %s2481_s0 = inlined_call_operand.hbm [shape: f32[2,16,96], index: 0, kind: input, shape index: {}]   ;;  %s2482_s1 = inlined_call_operand.hbm [shape: f32[2,96], index: 1, kind: input, shape index: {}]   ;;  %s2483_s2 = inlined_call_operand.hbm [shape: f32[2,32], index: 2, kind: input, shape index: {}]   ;;  %s2484_s3 = inlined_call_operand.hbm [shape: f32[32,96], index: 3, kind: input, shape index: {}]   ;;  %s2485_s4 = inlined_call_operand.vmem [shape: f32[1,96], index: 4, kind: input, shape index: {}]   ;;  %s2486_s5 = inlined_call_operand.hbm [shape: f32[2,16,32], index: 5, kind: output, shape index: {}]  }
   0x1   :  { %2489 = sst [smem:[#allocation17_spill]] %s2482_s1 }
   0x2   :  { %2490 = sst [smem:[#allocation18_spill]] %s2483_s2 }
   0x3   :  { %2491 = sst [smem:[#allocation19_spill]] %s2484_s3 }
   0x4   :  { %10 = vsyncpa [#allocation4], 0 }
   0x5   :  { %12 = vsyncpa [#allocation4 + $0x1], 0 }
   0x6   :  { %13 = vsyncpa [#allocation7], 0 }
   0x7   :  { %14 = vsyncpa [#allocation10], 0 }
   0x8   :  { %15 = vsyncpa [#allocation5], 0 }
   0x9   :  { %17 = vsyncpa [#allocation5 + $0x1], 0  ;;  %s2018_s18 = smov 0   ;;  %s2020_s19 = smov 0  }
   0xa   :  { %s2022_s20 = smov 0   ;;  %s2024_s21 = smov 0  }
   0xb   :  { %s2026_s22 = smov 0   ;;  %s2028_s23 = smov 0  }
   0xc LB: > { %2492 = sst [smem:[#allocation16_spill]] %s1974_s23  ;;  %s1519_s24 = sadd.s32 4294967295, %s1974_s23   ;;  %s1974_s23 = sphi %s2028_s23, %s23_s23   ;;  %s1970_s22 = sphi %s2026_s22, %s2510_s22   ;;  %s1966_s21 = sphi %s2024_s21, %s2509_s21   ;;  %s1962_s20 = sphi %s2022_s20, %s2508_s20   ;;  %s1958_s19 = sphi %s2020_s19, %s2507_s19   ;;  %s1954_s18 = sphi %s2018_s18, %s2506_s18  }
   0xd   : > { %s1520_s25 = sadd.s32 4294967294, %s1974_s23   ;;  %p51_p0 = scmp.ne.s32.totalorder %s1962_s20, %s1958_s19 }
   0xe   : > { %p52_p1 = scmp.eq.s32.totalorder %s1974_s23, 0  ;;  %p57_p2 = scmp.ne.s32.totalorder %s1958_s19, %s1954_s18 }
   0xf   : > { %p2056_p3 = scmp.eq.s32.totalorder %s1519_s24, 0  ;;  %p177_p4 = scmp.eq.s32.totalorder %s1519_s24, 1 }
  0x10   : > { %p2060_p5 = por %p52_p1, %p51_p0  ;;  %p183_p6 = scmp.eq.s32.totalorder %s1520_s25, 1 }
  0x11   : > { %p2066_p7 = por %p2056_p3, %p57_p2  ;;  %p2070_p8 = por %p177_p4, %p51_p0 }
  0x12   : > { %p2074_p9 = por %p183_p6, %p57_p2  ;;  %p1521_p10 = scmp.ge.s32.totalorder %s1974_s23, 1 }
  0x13   : > { %p190_p11 = scmp.lt.s32.totalorder %s1974_s23, 3  ;;  %s2498_s1 = sld [smem:[#allocation17_spill]] }
  0x14   : > { %s1976_s11 = smov [#allocation6]   ;;  %p1525_p13 = scmp.ge.s32.totalorder %s1974_s23, 2 }
  0x15   : > { %p2083_p12 = pnand %p1521_p10, %p190_p11  ;;  %s206_s12 = sshll.u32 %s1976_s11, 4  ;;  %s207_s12 = int_to_ptr.vmem [resolvable:$true] %s206_s12 }
  0x16   : > { %p1600_p1 = scmp.lt.s32.totalorder %s1974_s23, 2  ;;  %s2500_s2 = sld [smem:[#allocation18_spill]] }
  0x17   : > { %p1579_p0 = pneg %p2083_p12  ;;  %s1977_s24 = smov [#allocation8]  }
  0x18   : > { %p2102_p4 = pnand %p1600_p1, %p2060_p5  ;;  %s220_s25 = sshll.u32 %s1977_s24, 4  ;;  %s221_s25 = int_to_ptr.vmem [resolvable:$true] %s220_s25 }
  0x19   : > { %s204_s9 = sshll.u32 %s2498_s1, 4  ;;  %p2096_p2 = pnand %p1579_p0, %p2056_p3  ;;  %s205_s9 = int_to_ptr.hbm [resolvable:$true] %s204_s9 }
  0x1a   : > { %s2503_s3 = sld [smem:[#allocation19_spill]]  ;;  %s1978_s28 = smov [#allocation9]  }
  0x1b   : > { %1582 = dma.hbm_to_vmem [thread:$0]  (!%p2096_p2), %s205_s9, 32, %s207_s12, [#allocation7]  }
  0x1c   : > { %s218_s15 = sshll.u32 %s2500_s2, 4  ;;  %s231_s13 = sshll.u32 %s1978_s28, 4  ;;  %s219_s15 = int_to_ptr.hbm [resolvable:$true] %s218_s15  ;;  %s232_s13 = int_to_ptr.vmem [resolvable:$true] %s231_s13 }
  0x1d   : > { %1585 = dma.hbm_to_vmem [thread:$0]  (!%p2096_p2), %s219_s15, 32, %s221_s25, [#allocation7]  }
  0x1e   : > { %s1979_s14 = smov 128   ;;  %s1980_s26 = smov 8  }
  0x1f   : > { %s248_s24 = sand.u32 1, %s1962_s20   ;;  %s32_s9 = sadd.s32 1, %s1970_s22 }
  0x20   : > { %s229_s11 = sshll.u32 %s2503_s3, 4  ;;  %p33_p5 = scmp.ge.s32.totalorder %s32_s9, 2  ;;  %s230_s11 = int_to_ptr.hbm [resolvable:$true] %s229_s11 }
  0x21   : > { %1588 = dma.hbm_to_vmem [thread:$0]  (!%p2096_p2), %s230_s11, 512, %s232_s13, [#allocation10], %s1979_s14, %s1979_s14, %s1980_s26  }
  0x22   : > { %s1526_s12 = sshll.u32 %s248_s24, 4  ;;  %s1527_s15 = sshll.u32 %s1970_s22, 3 }
  0x23   : > { %s2512_s9 = smov (%p33_p5, %s32_s9), 0  ;;  %s259_s8 = scalar_lea.hbm %s2481_s0, %s1527_s15 }
  0x24   : > { %s252_s28 = scalar_lea.vmem [#allocation3], %s1526_s12  ;;  %s40_s2 = ssub.s32 %s1970_s22, %s2512_s9 }
  0x25   : > { %s262_s1 = sshll.u32 %s252_s28, 4  ;;  %s260_s16 = sshll.u32 %s259_s8, 4  ;;  %s261_s16 = int_to_ptr.hbm [resolvable:$true] %s260_s16  ;;  %s263_s1 = int_to_ptr.vmem [resolvable:$true] %s262_s1 }
  0x26   : > { %p42_p6 = scmp.eq.s32.totalorder %s40_s2, 0  ;;  %s2504_s11 = sadd.s32 1, %s1962_s20 }
  0x27   : > { %s249_s3 = scalar_lea.sflag [#allocation4], %s248_s24  ;;  %s1981_s23 = smov 256  }
  0x28   : > { %s2128_s13 = scalar_select %p42_p6, %s1962_s20, %s2504_s11  }
  0x29   : > { %1592 = dma.hbm_to_vmem [thread:$0]  (!%p2102_p4), %s261_s16, 256, %s263_s1, %s249_s3, %s1981_s23, %s1979_s14, %s1980_s26  }
  0x2a   : > { %274 = sbr.rel (%p2083_p12) target bundleno = 5821 (0x16bd), region = 40  ;;  %s2135_s15 = sand.u32 (!%p2083_p12), 1, %s1958_s19  }
  0x2b   : > { %s1529_s12 = sshll.u32 (!%p2083_p12), %s2135_s15, 4  ;;  %s277_s2 = scalar_lea.sflag (!%p2083_p12), [#allocation4], %s2135_s15 }
  0x2c   : > { %s2139_s25 = scalar_lea.vmem (!%p2083_p12), [#allocation3], %s1529_s12 }
  0x2f   : > { %1937 = dma.done.wait (%p2066_p7), %s277_s2, 256  }
  0x30   : > { %1939 = vsyncadd (%p2066_p7), %s277_s2, 4294967040 }
  0x31   : > { %1941 = dma.done.wait (%p2056_p3), [#allocation7], 64  }
  0x32   : > { %1943 = vsyncadd (%p2056_p3), [#allocation7], 4294967232 }
  0x33   : > { %1945 = dma.done.wait (%p2056_p3), [#allocation10], 512  }
  0x34   : > { %1947 = vsyncadd (%p2056_p3), [#allocation10], 4294966784  ;;  %s2153_s1 = scalar_lea.vmem [#allocation11], %s1529_s12  ;;  %p1534_p10 = scmp.ne.s32.totalorder %s1966_s21, 0 }
  0x36   : > { %328 = sbr.rel (%p1534_p10) target bundleno = 61 (0x3d), region = 60 }
  0x3b   : > { %v329_v0 = vld [vmem:[#allocation8] sm:$0x3]  ;;  %vm330_vm0 = vcmask 254976  }
  0x3c   : > { %331 = vst.msk [vmem:[#allocation2] sm:$0x3] %vm330_vm0, %v329_v0 }
  0x3d PF: > { %v336_v1 = vld [vmem:[#allocation9 + $0x18] sm:$0xff]  ;;  %v335_v2 = vld [vmem:[#allocation9 + $0x10] sm:$0xff]  ;;  %v334_v3 = vld [vmem:[#allocation9 + $0x8] sm:$0xff]  ;;  %vm344_vm1 = vcmask 261120   ;;  %s1982_s26 = smov 64   ;;  %vm443_vm10 = vcmask 1041409  }
  0x3e   : > { %360 = vmatpush.msra.mxu0 %v336_v1  ;;  %500 = vmatpush.msra.mxu1 %v336_v1  ;;  %v333_v4 = vld [vmem:[#allocation9] sm:$0xff]  ;;  %v2163_v6 = vld [vmem:[%s2485_s4] ss:$0 sm:$0xff]  ;;  %v2168_v10 = vld [vmem:[#allocation6] sm:$0x3]  ;;  %s1983_s27 = smov 32  }
  0x3f   : > { %628 = vmatpush.msra.mxu2 %v336_v1  ;;  %756 = vmatpush.msra.mxu3 %v336_v1  ;;  %v340_v11 = vld [vmem:[%s2139_s25 + $0x8] sm:$0x1]  ;;  %v2172_v13 = vrot.slane %v2168_v10, 1  ;;  %v339_v15 = vld [vmem:[%s2139_s25] sm:$0x1]  ;;  %s1984_s29 = smov 96  }
  0x40   : > { %361 = vmatpush.msra.mxu0 %v335_v2  ;;  %501 = vmatpush.msra.mxu1 %v335_v2  ;;  %s1560_s14 = sshll.u32 %s1966_s21, 3  ;;  %s1398_s28 = sshll.u32 %s2153_s1, 4  ;;  %s1399_s28 = int_to_ptr.vmem [resolvable:$true] %s1398_s28 }
  0x41   : > { %629 = vmatpush.msra.mxu2 %v335_v2  ;;  %757 = vmatpush.msra.mxu3 %v335_v2  ;;  %s1397_s8 = scalar_lea.hbm %s2486_s5, %s1560_s14  ;;  %s1384_s11 = scalar_lea.sflag [#allocation5], %s2135_s15 }
  0x42   : > { %362 = vmatpush.msra.mxu0 %v334_v3  ;;  %502 = vmatpush.msra.mxu1 %v334_v3  ;;  %s1400_s16 = sshll.u32 %s1397_s8, 4  ;;  %s1904_s3 = scalar_lea.hbm %s2486_s5, 32  ;;  %s1401_s16 = int_to_ptr.hbm [resolvable:$true] %s1400_s16 }
  0x43   : > { %v2156_v5 = vld [vmem:[#allocation2] sm:$0x3]  ;;  %630 = vmatpush.msra.mxu2 %v334_v3  ;;  %758 = vmatpush.msra.mxu3 %v334_v3  ;;  %s1898_s12 = sshra.s32 %s1401_s16, 4  ;;  %s1899_s12 = int_to_ptr.hbm [resolvable:$true] %s1898_s12 }
  0x44   : > { %363 = vmatpush.msra.mxu0 %v333_v4  ;;  %503 = vmatpush.msra.mxu1 %v333_v4  ;;  %s1900_s2 = scalar_lea.hbm %s1899_s12, 16  ;;  %p1905_p12 = scmp.lt.s32.totalorder %s1899_s12, %s2486_s5 }
  0x45   : > { %1535 = vmatmul.msk.f32.vlgmr.msra.gmra.mxu0 %vm344_vm1, %v2156_v5  ;;  %631 = vmatpush.msra.mxu2 %v333_v4  ;;  %p1901_p3 = scmp.ne.s32.totalorder %s1899_s12, %s1900_s2  ;;  %p1906_p0 = scmp.lt.s32.totalorder %s1904_s3, %s1900_s2 }
  0x46   : > { %759 = vmatpush.msra.mxu3 %v333_v4  ;;  %884 = vmatpush.msrb.mxu0 %v336_v1 }
  0x47   : > { %1012 = vmatpush.msrb.mxu1 %v336_v1  ;;  %1140 = vmatpush.msrb.mxu2 %v336_v1  ;;  %p1902_p7 = pnand %p1901_p3, %p2070_p8  ;;  %p1907_p1 = por %p1906_p0, %p1905_p12 }
  0x48   : > { %885 = vmatpush.msrb.mxu0 %v335_v2  ;;  %1268 = vmatpush.msrb.mxu3 %v336_v1 }
  0x49   : > { %1013 = vmatpush.msrb.mxu1 %v335_v2  ;;  %1141 = vmatpush.msrb.mxu2 %v335_v2  ;;  %p1903_p11 = pneg %p1902_p7 }
  0x4a   : > { %886 = vmatpush.msrb.mxu0 %v334_v3  ;;  %1269 = vmatpush.msrb.mxu3 %v335_v2 }
  0x4b   : > { %1014 = vmatpush.msrb.mxu1 %v334_v3  ;;  %1142 = vmatpush.msrb.mxu2 %v334_v3  ;;  %p1908_p2 = pnand %p1907_p1, %p1903_p11 }
  0x4c   : > { %887 = vmatpush.msrb.mxu0 %v333_v4  ;;  %1270 = vmatpush.msrb.mxu3 %v334_v3 }
  0x4d   : > { %1015 = vmatpush.msrb.mxu1 %v333_v4  ;;  %1143 = vmatpush.msrb.mxu2 %v333_v4 }
  0x4e   : > { %1271 = vmatpush.msrb.mxu3 %v333_v4 }
  0xc2   : > { %v365_v7 = vpop.f32.mrf.mxu0 }
  0xc3   : > { %v366_v8 = vadd.f32 %v2163_v6, %v365_v7 }
  0xc5   : > { %v369_v9 = vrot.slane %v366_v8, 1  ;;  %v372_v16 = vadd.f32 %v366_v8, %v339_v15 }
  0xc7   : > { %420 = vrot.lane.b32.xlu0 %v369_v9, %s1982_s26  ;;  %v373_v12 = vadd.f32 %v369_v9, %v340_v11  ;;  %v378_v18 = vadd.f32 %v372_v16, %v2168_v10 }
  0xc9   : > { %v379_v14 = vadd.f32 %v2172_v13, %v373_v12  ;;  %v1536_v19 = vmul.f32 -1.442695, %v378_v18 }
  0xcb   : > { %v1537_v17 = vmul.f32 -1.442695, %v379_v14  ;;  %v480_v14 = vld [vmem:[%s2139_s25 + $0x1] sm:$0x1] }
  0xcd   : > { %1666 = vpow2.f32 %v1537_v17 }
  0xce   : > { %1668 = vpow2.f32 %v1536_v19 }
  0xcf   : > { %418 = vrot.lane.b32.xlu0 %v366_v8, %s1982_s26 }
  0xd3   : > { %v1667_v20 = vpop.eup %1666 }
  0xd4   : > { %v387_v21 = vadd.f32 1.0, %v1667_v20  ;;  %v1669_v22 = vpop.eup %1668  ;;  %v481_v20 = vld [vmem:[%s2139_s25 + $0x9] sm:$0x1] }
  0xd5   : > { %v386_v23 = vadd.f32 1.0, %v1669_v22 }
  0xd6   : > { %1670 = vrcp.f32 %v387_v21  ;;  %v414_v32 = vand.u32 2147483648, %v387_v21  ;;  %vm408_vm3 = vweird.f32 %v387_v21  ;;  %v412_v33 = vand.u32 2147483647, %v387_v21 }
  0xd7   : > { %1672 = vrcp.f32 %v386_v23  ;;  %v399_v41 = vand.u32 2147483648, %v386_v23  ;;  %vm393_vm7 = vweird.f32 %v386_v23  ;;  %v397_v42 = vand.u32 2147483647, %v386_v23 }
  0xd8   : > { %v415_v36 = vor.u32 1.1754944e-38, %v414_v32  ;;  %vm413_vm5 = vcmp.eq.f32.partialorder %v412_v33, 8.507059e+37 }
  0xd9   : > { %v400_v44 = vor.u32 1.1754944e-38, %v399_v41  ;;  %vm398_vm9 = vcmp.eq.f32.partialorder %v397_v42, 8.507059e+37 }
  0xdc   : > { %v1671_v24 = vpop.eup %1670 }
  0xdd   : > { %v404_v25 = vmul.f32 %v1671_v24, %v387_v21  ;;  %v1673_v27 = vpop.eup %1672  ;;  %vm409_vm2 = vweird.f32 %v1671_v24 }
  0xde   : > { %v389_v29 = vmul.f32 %v1673_v27, %v386_v23  ;;  %vm410_vm4 = vmor %vm408_vm3, %vm409_vm2  ;;  %vm394_vm6 = vweird.f32 %v1673_v27 }
  0xdf   : > { %v405_v26 = vsub.f32 1.0, %v404_v25  ;;  %vm395_vm8 = vmor %vm393_vm7, %vm394_vm6 }
  0xe0   : > { %v390_v31 = vsub.f32 1.0, %v389_v29 }
  0xe1   : > { %v406_v28 = vmul.f32 %v1671_v24, %v405_v26 }
  0xe2   : > { %v391_v35 = vmul.f32 %v1673_v27, %v390_v31 }
  0xe3   : > { %v407_v30 = vadd.f32 %v1671_v24, %v406_v28 }
  0xe4   : > { %v392_v40 = vadd.f32 %v1673_v27, %v391_v35 }
  0xe5   : > { %v411_v34 = vsel %vm410_vm4, %v1671_v24, %v407_v30 }
  0xe6   : > { %v416_v38 = vsel %vm413_vm5, %v415_v36, %v411_v34  ;;  %v396_v43 = vsel %vm395_vm8, %v1673_v27, %v392_v40 }
  0xe7   : > { %v401_v46 = vsel %vm398_vm9, %v400_v44, %v396_v43 }
 0x139   : > { %v421_v37 = vpop.permute.xlu0 %420 }
 0x13a   : > { %v425_v39 = vmul.f32 %v421_v37, %v416_v38 }
 0x13c   : > { %430 = vrot.lane.b32.xlu1 %v425_v39, %s1982_s26 }
 0x141   : > { %v419_v45 = vpop.permute.xlu0 %418 }
 0x142   : > { %v424_v47 = vmul.f32 %v419_v45, %v401_v46 }
 0x144   : > { %428 = vrot.lane.b32.xlu1 %v424_v47, %s1982_s26 }
 0x1ae   : > { %v431_v48 = vpop.permute.xlu1 %430 }
 0x1af   : > { %v435_v49 = vadd.f32 %v431_v48, %v340_v11 }
 0x1b1   : > { %v437_v50 = vadd.f32 %v435_v49, %v2172_v13 }
 0x1b3   : > { %1674 = vtanh.f32 %v437_v50 }
 0x1b6   : > { %v429_v51 = vpop.permute.xlu1 %428 }
 0x1b7   : > { %v434_v52 = vadd.f32 %v429_v51, %v339_v15 }
 0x1b9   : > { %v436_v53 = vadd.f32 %v434_v52, %v2168_v10  ;;  %v1675_v54 = vpop.eup %1674 }
 0x1ba   : > { %v442_v55 = vrot.slane %v1675_v54, 7 }
 0x1bb   : > { %1676 = vtanh.f32 %v436_v53 }
 0x1c1   : > { %v1677_v56 = vpop.eup %1676 }
 0x1c2   : > { %v444_v57 = vsel %vm443_vm10, %v442_v55, %v1677_v56 }
 0x1c3   : > { %445 = vrot.lane.b32.xlu2 %v444_v57, %s1982_s26 }
 0x21d   : > { %v446_v58 = vpop.permute.xlu2 %445 }
 0x21e   : > { %v448_v59 = vsub.f32 %v2156_v5, %v446_v58 }
 0x220   : > { %v450_v60 = vrot.slane %v448_v59, 1  ;;  %451 = vrot.lane.b32.xlu0 %v448_v59, %s1983_s27 }
 0x222   : > { %453 = vrot.lane.b32.xlu2 %v450_v60, %s1983_s27 }
 0x27c   : > { %v454_v61 = vpop.permute.xlu2 %453 }
 0x27d   : > { %v458_v62 = vmul.f32 %v454_v61, %v416_v38 }
 0x27f   : > { %463 = vrot.lane.b32.xlu1 %v458_v62, %s1983_s27 }
 0x292   : > { %v452_v63 = vpop.permute.xlu0 %451 }
 0x293   : > { %v457_v0 = vmul.f32 %v452_v63, %v401_v46 }
 0x295   : > { %461 = vrot.lane.b32.xlu2 %v457_v0, %s1983_s27 }
 0x2ef   : > { %v462_v1 = vpop.permute.xlu2 %461 }
 0x2f0   : > { %v2190_v4 = vadd.f32 %v1677_v56, %v462_v1 }
 0x2f1   : > { %v464_v2 = vpop.permute.xlu1 %463 }
 0x2f2   : > { %v2188_v3 = vadd.f32 %v1675_v54, %v464_v2 }
 0x2f4   : > { %v482_v5 = vrot.slane %v2188_v3, 7 }
 0x2f6   : > { %v483_v7 = vsel %vm443_vm10, %v482_v5, %v2190_v4 }
 0x2f7   : > { %484 = vrot.lane.b32.xlu0 %v483_v7, %s1982_s26 }
 0x369   : > { %v485_v8 = vpop.permute.xlu0 %484 }
 0x36a   : > { %1538 = vmatmul.msk.f32.vlgmr.msra.gmra.mxu1 %vm344_vm1, %v485_v8 }
 0x3e7   : > { %v505_v9 = vpop.f32.mrf.mxu1 }
 0x3e8   : > { %v506_v11 = vadd.f32 %v2163_v6, %v505_v9 }
 0x3ea   : > { %554 = vrot.lane.b32.xlu2 %v506_v11, %s1982_s26  ;;  %v509_v12 = vrot.slane %v506_v11, 1  ;;  %v512_v15 = vadd.f32 %v506_v11, %v480_v14 }
 0x3ec   : > { %556 = vrot.lane.b32.xlu1 %v509_v12, %s1982_s26  ;;  %v514_v16 = vadd.f32 %v512_v15, %v2168_v10  ;;  %v513_v21 = vadd.f32 %v509_v12, %v481_v20  ;;  %v608_v15 = vld [vmem:[%s2139_s25 + $0x2] sm:$0x1] }
 0x3ee   : > { %v1539_v17 = vmul.f32 -1.442695, %v514_v16  ;;  %v515_v22 = vadd.f32 %v513_v21, %v2172_v13  ;;  %v609_v21 = vld [vmem:[%s2139_s25 + $0xa] sm:$0x1] }
 0x3f0   : > { %1678 = vpow2.f32 %v1539_v17  ;;  %v1540_v24 = vmul.f32 -1.442695, %v515_v22 }
 0x3f6   : > { %v1679_v18 = vpop.eup %1678 }
 0x3f7   : > { %v522_v19 = vadd.f32 1.0, %v1679_v18 }
 0x3f9   : > { %1680 = vrcp.f32 %v522_v19  ;;  %v535_v31 = vand.u32 2147483648, %v522_v19  ;;  %vm529_vm12 = vweird.f32 %v522_v19  ;;  %v533_v32 = vand.u32 2147483647, %v522_v19 }
 0x3fa   : > { %1682 = vpow2.f32 %v1540_v24 }
 0x3fb   : > { %v536_v34 = vor.u32 1.1754944e-38, %v535_v31  ;;  %vm534_vm14 = vcmp.eq.f32.partialorder %v533_v32, 8.507059e+37 }
 0x3ff   : > { %v1681_v23 = vpop.eup %1680 }
 0x400   : > { %v525_v25 = vmul.f32 %v1681_v23, %v522_v19  ;;  %v1683_v28 = vpop.eup %1682  ;;  %vm530_vm11 = vweird.f32 %v1681_v23 }
 0x401   : > { %v523_v30 = vadd.f32 1.0, %v1683_v28  ;;  %vm531_vm13 = vmor %vm529_vm12, %vm530_vm11 }
 0x402   : > { %v526_v26 = vsub.f32 1.0, %v525_v25 }
 0x403   : > { %1684 = vrcp.f32 %v523_v30  ;;  %v550_v43 = vand.u32 2147483648, %v523_v30  ;;  %vm544_vm0 = vweird.f32 %v523_v30  ;;  %v548_v44 = vand.u32 2147483647, %v523_v30 }
 0x404   : > { %v527_v27 = vmul.f32 %v1681_v23, %v526_v26 }
 0x405   : > { %v551_v46 = vor.u32 1.1754944e-38, %v550_v43  ;;  %vm549_vm3 = vcmp.eq.f32.partialorder %v548_v44, 8.507059e+37 }
 0x406   : > { %v528_v29 = vadd.f32 %v1681_v23, %v527_v27 }
 0x408   : > { %v532_v33 = vsel %vm531_vm13, %v1681_v23, %v528_v29 }
 0x409   : > { %v537_v36 = vsel %vm534_vm14, %v536_v34, %v532_v33  ;;  %v1685_v38 = vpop.eup %1684 }
 0x40a   : > { %v540_v39 = vmul.f32 %v1685_v38, %v523_v30  ;;  %vm545_vm15 = vweird.f32 %v1685_v38 }
 0x40b   : > { %vm546_vm2 = vmor %vm544_vm0, %vm545_vm15 }
 0x40c   : > { %v541_v40 = vsub.f32 1.0, %v540_v39 }
 0x40e   : > { %v542_v41 = vmul.f32 %v1685_v38, %v541_v40 }
 0x410   : > { %v543_v42 = vadd.f32 %v1685_v38, %v542_v41 }
 0x412   : > { %v547_v45 = vsel %vm546_vm2, %v1685_v38, %v543_v42 }
 0x413   : > { %v552_v48 = vsel %vm549_vm3, %v551_v46, %v547_v45 }
 0x444   : > { %v555_v35 = vpop.permute.xlu2 %554 }
 0x445   : > { %v560_v37 = vmul.f32 %v555_v35, %v537_v36 }
 0x447   : > { %564 = vrot.lane.b32.xlu1 %v560_v37, %s1982_s26 }
 0x45e   : > { %v557_v47 = vpop.permute.xlu1 %556 }
 0x45f   : > { %v561_v49 = vmul.f32 %v557_v47, %v552_v48 }
 0x461   : > { %566 = vrot.lane.b32.xlu0 %v561_v49, %s1982_s26 }
 0x4b9   : > { %v565_v50 = vpop.permute.xlu1 %564 }
 0x4ba   : > { %v570_v51 = vadd.f32 %v565_v50, %v480_v14 }
 0x4bc   : > { %v572_v52 = vadd.f32 %v570_v51, %v2168_v10 }
 0x4be   : > { %1686 = vtanh.f32 %v572_v52 }
 0x4c4   : > { %v1687_v53 = vpop.eup %1686 }
 0x4c5   : > { %v576_v54 = vsub.f32 %v2190_v4, %v1687_v53 }
 0x4c7   : > { %580 = vrot.lane.b32.xlu0 %v576_v54, %s1984_s29 }
 0x4d3   : > { %v567_v55 = vpop.permute.xlu0 %566 }
 0x4d4   : > { %v571_v56 = vadd.f32 %v567_v55, %v481_v20 }
 0x4d6   : > { %v573_v57 = vadd.f32 %v571_v56, %v2172_v13 }
 0x4d8   : > { %1688 = vtanh.f32 %v573_v57 }
 0x4de   : > { %v1689_v58 = vpop.eup %1688 }
 0x4df   : > { %v577_v59 = vsub.f32 %v2188_v3, %v1689_v58 }
 0x4e1   : > { %582 = vrot.lane.b32.xlu2 %v577_v59, %s1984_s29 }
 0x539   : > { %v581_v60 = vpop.permute.xlu0 %580 }
 0x53a   : > { %v586_v61 = vmul.f32 %v581_v60, %v537_v36 }
 0x53b   : > { %v583_v62 = vpop.permute.xlu2 %582 }
 0x53c   : > { %v587_v63 = vmul.f32 %v583_v62, %v552_v48  ;;  %590 = vrot.lane.b32.xlu2 %v586_v61, %s1983_s27 }
 0x53e   : > { %592 = vrot.lane.b32.xlu1 %v587_v63, %s1983_s27 }
 0x596   : > { %v591_v0 = vpop.permute.xlu2 %590 }
 0x597   : > { %v2216_v5 = vadd.f32 %v1687_v53, %v591_v0 }
 0x5b0   : > { %v593_v1 = vpop.permute.xlu1 %592 }
 0x5b1   : > { %v2214_v2 = vadd.f32 %v1689_v58, %v593_v1 }
 0x5b3   : > { %v610_v7 = vrot.slane %v2214_v2, 7 }
 0x5b5   : > { %v611_v8 = vsel %vm443_vm10, %v610_v7, %v2216_v5 }
 0x5b6   : > { %612 = vrot.lane.b32.xlu0 %v611_v8, %s1982_s26 }
 0x628   : > { %v613_v9 = vpop.permute.xlu0 %612 }
 0x629   : > { %1541 = vmatmul.msk.f32.vlgmr.msra.gmra.mxu2 %vm344_vm1, %v613_v9 }
 0x6ac   : > { %v633_v11 = vpop.f32.mrf.mxu2 }
 0x6ad   : > { %v634_v12 = vadd.f32 %v2163_v6, %v633_v11 }
 0x6af   : > { %682 = vrot.lane.b32.xlu2 %v634_v12, %s1982_s26  ;;  %v637_v14 = vrot.slane %v634_v12, 1  ;;  %v640_v16 = vadd.f32 %v634_v12, %v608_v15 }
 0x6b1   : > { %684 = vrot.lane.b32.xlu1 %v637_v14, %s1982_s26  ;;  %v642_v17 = vadd.f32 %v640_v16, %v2168_v10  ;;  %v641_v22 = vadd.f32 %v637_v14, %v609_v21 }
 0x6b3   : > { %v1542_v18 = vmul.f32 -1.442695, %v642_v17  ;;  %v643_v23 = vadd.f32 %v641_v22, %v2172_v13 }
 0x6b5   : > { %1690 = vpow2.f32 %v1542_v18  ;;  %v1543_v25 = vmul.f32 -1.442695, %v643_v23  ;;  %v736_v18 = vld [vmem:[%s2139_s25 + $0x3] sm:$0x1] }
 0x6bb   : > { %v1691_v19 = vpop.eup %1690 }
 0x6bc   : > { %v650_v20 = vadd.f32 1.0, %v1691_v19 }
 0x6be   : > { %1692 = vrcp.f32 %v650_v20  ;;  %v663_v32 = vand.u32 2147483648, %v650_v20  ;;  %vm657_vm5 = vweird.f32 %v650_v20  ;;  %v661_v33 = vand.u32 2147483647, %v650_v20 }
 0x6bf   : > { %1694 = vpow2.f32 %v1543_v25 }
 0x6c0   : > { %v664_v35 = vor.u32 1.1754944e-38, %v663_v32  ;;  %vm662_vm7 = vcmp.eq.f32.partialorder %v661_v33, 8.507059e+37 }
 0x6c4   : > { %v1693_v24 = vpop.eup %1692 }
 0x6c5   : > { %v653_v26 = vmul.f32 %v1693_v24, %v650_v20  ;;  %v1695_v29 = vpop.eup %1694  ;;  %vm658_vm4 = vweird.f32 %v1693_v24 }
 0x6c6   : > { %v651_v31 = vadd.f32 1.0, %v1695_v29  ;;  %vm659_vm6 = vmor %vm657_vm5, %vm658_vm4 }
 0x6c7   : > { %v654_v27 = vsub.f32 1.0, %v653_v26 }
 0x6c8   : > { %1696 = vrcp.f32 %v651_v31  ;;  %v678_v44 = vand.u32 2147483648, %v651_v31  ;;  %vm672_vm9 = vweird.f32 %v651_v31  ;;  %v676_v45 = vand.u32 2147483647, %v651_v31 }
 0x6c9   : > { %v655_v28 = vmul.f32 %v1693_v24, %v654_v27 }
 0x6ca   : > { %v679_v47 = vor.u32 1.1754944e-38, %v678_v44  ;;  %vm677_vm12 = vcmp.eq.f32.partialorder %v676_v45, 8.507059e+37 }
 0x6cb   : > { %v656_v30 = vadd.f32 %v1693_v24, %v655_v28 }
 0x6cd   : > { %v660_v34 = vsel %vm659_vm6, %v1693_v24, %v656_v30  ;;  %v737_v24 = vld [vmem:[%s2139_s25 + $0xb] sm:$0x1] }
 0x6ce   : > { %v665_v37 = vsel %vm662_vm7, %v664_v35, %v660_v34  ;;  %v1697_v39 = vpop.eup %1696 }
 0x6cf   : > { %v668_v40 = vmul.f32 %v1697_v39, %v651_v31  ;;  %vm673_vm8 = vweird.f32 %v1697_v39 }
 0x6d0   : > { %vm674_vm11 = vmor %vm672_vm9, %vm673_vm8 }
 0x6d1   : > { %v669_v41 = vsub.f32 1.0, %v668_v40 }
 0x6d3   : > { %v670_v42 = vmul.f32 %v1697_v39, %v669_v41 }
 0x6d5   : > { %v671_v43 = vadd.f32 %v1697_v39, %v670_v42 }
 0x6d7   : > { %v675_v46 = vsel %vm674_vm11, %v1697_v39, %v671_v43 }
 0x6d8   : > { %v680_v49 = vsel %vm677_vm12, %v679_v47, %v675_v46 }
 0x709   : > { %v683_v36 = vpop.permute.xlu2 %682 }
 0x70a   : > { %v688_v38 = vmul.f32 %v683_v36, %v665_v37 }
 0x70c   : > { %692 = vrot.lane.b32.xlu1 %v688_v38, %s1982_s26 }
 0x723   : > { %v685_v48 = vpop.permute.xlu1 %684 }
 0x724   : > { %v689_v50 = vmul.f32 %v685_v48, %v680_v49 }
 0x726   : > { %694 = vrot.lane.b32.xlu0 %v689_v50, %s1982_s26 }
 0x77e   : > { %v693_v51 = vpop.permute.xlu1 %692 }
 0x77f   : > { %v698_v52 = vadd.f32 %v693_v51, %v608_v15 }
 0x781   : > { %v700_v53 = vadd.f32 %v698_v52, %v2168_v10 }
 0x783   : > { %1698 = vtanh.f32 %v700_v53 }
 0x789   : > { %v1699_v54 = vpop.eup %1698 }
 0x78a   : > { %v704_v55 = vsub.f32 %v2216_v5, %v1699_v54 }
 0x78c   : > { %708 = vrot.lane.b32.xlu0 %v704_v55, %s1984_s29 }
 0x798   : > { %v695_v56 = vpop.permute.xlu0 %694 }
 0x799   : > { %v699_v57 = vadd.f32 %v695_v56, %v609_v21 }
 0x79b   : > { %v701_v58 = vadd.f32 %v699_v57, %v2172_v13 }
 0x79d   : > { %1700 = vtanh.f32 %v701_v58 }
 0x7a3   : > { %v1701_v59 = vpop.eup %1700 }
 0x7a4   : > { %v705_v60 = vsub.f32 %v2214_v2, %v1701_v59 }
 0x7a6   : > { %710 = vrot.lane.b32.xlu2 %v705_v60, %s1984_s29 }
 0x7fe   : > { %v709_v61 = vpop.permute.xlu0 %708 }
 0x7ff   : > { %v714_v62 = vmul.f32 %v709_v61, %v665_v37 }
 0x800   : > { %v711_v63 = vpop.permute.xlu2 %710 }
 0x801   : > { %v715_v0 = vmul.f32 %v711_v63, %v680_v49  ;;  %718 = vrot.lane.b32.xlu2 %v714_v62, %s1983_s27 }
 0x803   : > { %720 = vrot.lane.b32.xlu1 %v715_v0, %s1983_s27 }
 0x85b   : > { %v719_v1 = vpop.permute.xlu2 %718 }
 0x85c   : > { %v2242_v9 = vadd.f32 %v1699_v54, %v719_v1 }
 0x875   : > { %v721_v7 = vpop.permute.xlu1 %720 }
 0x876   : > { %v2240_v8 = vadd.f32 %v1701_v59, %v721_v7 }
 0x878   : > { %v738_v11 = vrot.slane %v2240_v8, 7 }
 0x87a   : > { %v739_v12 = vsel %vm443_vm10, %v738_v11, %v2242_v9 }
 0x87b   : > { %740 = vrot.lane.b32.xlu0 %v739_v12, %s1982_s26 }
 0x8ed   : > { %v741_v14 = vpop.permute.xlu0 %740 }
 0x8ee   : > { %1544 = vmatmul.msk.f32.vlgmr.msra.gmra.mxu3 %vm344_vm1, %v741_v14 }
 0x971   : > { %v761_v15 = vpop.f32.mrf.mxu3 }
 0x972   : > { %v762_v16 = vadd.f32 %v2163_v6, %v761_v15 }
 0x974   : > { %810 = vrot.lane.b32.xlu2 %v762_v16, %s1982_s26  ;;  %v765_v17 = vrot.slane %v762_v16, 1  ;;  %v768_v19 = vadd.f32 %v762_v16, %v736_v18 }
 0x976   : > { %812 = vrot.lane.b32.xlu1 %v765_v17, %s1982_s26  ;;  %v770_v20 = vadd.f32 %v768_v19, %v2168_v10  ;;  %v769_v25 = vadd.f32 %v765_v17, %v737_v24 }
 0x978   : > { %v1545_v21 = vmul.f32 -1.442695, %v770_v20  ;;  %v771_v26 = vadd.f32 %v769_v25, %v2172_v13 }
 0x97a   : > { %1702 = vpow2.f32 %v1545_v21  ;;  %v1546_v28 = vmul.f32 -1.442695, %v771_v26 }
 0x980   : > { %v1703_v22 = vpop.eup %1702 }
 0x981   : > { %v778_v23 = vadd.f32 1.0, %v1703_v22 }
 0x983   : > { %1704 = vrcp.f32 %v778_v23  ;;  %v791_v35 = vand.u32 2147483648, %v778_v23  ;;  %vm785_vm14 = vweird.f32 %v778_v23  ;;  %v789_v36 = vand.u32 2147483647, %v778_v23 }
 0x984   : > { %1706 = vpow2.f32 %v1546_v28 }
 0x985   : > { %v792_v38 = vor.u32 1.1754944e-38, %v791_v35  ;;  %vm790_vm0 = vcmp.eq.f32.partialorder %v789_v36, 8.507059e+37 }
 0x989   : > { %v1705_v27 = vpop.eup %1704 }
 0x98a   : > { %v781_v29 = vmul.f32 %v1705_v27, %v778_v23  ;;  %v1707_v32 = vpop.eup %1706  ;;  %vm786_vm13 = vweird.f32 %v1705_v27  ;;  %v864_v23 = vld [vmem:[%s2139_s25 + $0x4] sm:$0x1] }
 0x98b   : > { %v779_v34 = vadd.f32 1.0, %v1707_v32  ;;  %vm787_vm15 = vmor %vm785_vm14, %vm786_vm13 }
 0x98c   : > { %v782_v30 = vsub.f32 1.0, %v781_v29  ;;  %v865_v29 = vld [vmem:[%s2139_s25 + $0xc] sm:$0x1] }
 0x98d   : > { %1708 = vrcp.f32 %v779_v34  ;;  %v806_v47 = vand.u32 2147483648, %v779_v34  ;;  %vm800_vm3 = vweird.f32 %v779_v34  ;;  %v804_v48 = vand.u32 2147483647, %v779_v34 }
 0x98e   : > { %v783_v31 = vmul.f32 %v1705_v27, %v782_v30 }
 0x98f   : > { %v807_v50 = vor.u32 1.1754944e-38, %v806_v47  ;;  %vm805_vm5 = vcmp.eq.f32.partialorder %v804_v48, 8.507059e+37 }
 0x990   : > { %v784_v33 = vadd.f32 %v1705_v27, %v783_v31 }
 0x992   : > { %v788_v37 = vsel %vm787_vm15, %v1705_v27, %v784_v33 }
 0x993   : > { %v793_v40 = vsel %vm790_vm0, %v792_v38, %v788_v37  ;;  %v1709_v42 = vpop.eup %1708 }
 0x994   : > { %v796_v43 = vmul.f32 %v1709_v42, %v779_v34  ;;  %vm801_vm2 = vweird.f32 %v1709_v42 }
 0x995   : > { %vm802_vm4 = vmor %vm800_vm3, %vm801_vm2 }
 0x996   : > { %v797_v44 = vsub.f32 1.0, %v796_v43 }
 0x998   : > { %v798_v45 = vmul.f32 %v1709_v42, %v797_v44 }
 0x99a   : > { %v799_v46 = vadd.f32 %v1709_v42, %v798_v45 }
 0x99c   : > { %v803_v49 = vsel %vm802_vm4, %v1709_v42, %v799_v46 }
 0x99d   : > { %v808_v52 = vsel %vm805_vm5, %v807_v50, %v803_v49 }
 0x9ce   : > { %v811_v39 = vpop.permute.xlu2 %810 }
 0x9cf   : > { %v816_v41 = vmul.f32 %v811_v39, %v793_v40 }
 0x9d1   : > { %820 = vrot.lane.b32.xlu1 %v816_v41, %s1982_s26 }
 0x9e8   : > { %v813_v51 = vpop.permute.xlu1 %812 }
 0x9e9   : > { %v817_v53 = vmul.f32 %v813_v51, %v808_v52 }
 0x9eb   : > { %822 = vrot.lane.b32.xlu0 %v817_v53, %s1982_s26 }
 0xa43   : > { %v821_v54 = vpop.permute.xlu1 %820 }
 0xa44   : > { %v826_v55 = vadd.f32 %v821_v54, %v736_v18 }
 0xa46   : > { %v828_v56 = vadd.f32 %v826_v55, %v2168_v10 }
 0xa48   : > { %1710 = vtanh.f32 %v828_v56 }
 0xa4e   : > { %v1711_v57 = vpop.eup %1710 }
 0xa4f   : > { %v832_v58 = vsub.f32 %v2242_v9, %v1711_v57 }
 0xa51   : > { %836 = vrot.lane.b32.xlu0 %v832_v58, %s1984_s29 }
 0xa5d   : > { %v823_v59 = vpop.permute.xlu0 %822 }
 0xa5e   : > { %v827_v60 = vadd.f32 %v823_v59, %v737_v24 }
 0xa60   : > { %v829_v61 = vadd.f32 %v827_v60, %v2172_v13 }
 0xa62   : > { %1712 = vtanh.f32 %v829_v61 }
 0xa68   : > { %v1713_v62 = vpop.eup %1712 }
 0xa69   : > { %v833_v63 = vsub.f32 %v2240_v8, %v1713_v62 }
 0xa6b   : > { %838 = vrot.lane.b32.xlu2 %v833_v63, %s1984_s29 }
 0xac3   : > { %v837_v0 = vpop.permute.xlu0 %836 }
 0xac4   : > { %v842_v1 = vmul.f32 %v837_v0, %v793_v40 }
 0xac5   : > { %v839_v7 = vpop.permute.xlu2 %838 }
 0xac6   : > { %v843_v11 = vmul.f32 %v839_v7, %v808_v52  ;;  %846 = vrot.lane.b32.xlu2 %v842_v1, %s1983_s27 }
 0xac8   : > { %848 = vrot.lane.b32.xlu1 %v843_v11, %s1983_s27 }
 0xb20   : > { %v847_v12 = vpop.permute.xlu2 %846 }
 0xb21   : > { %v2268_v16 = vadd.f32 %v1711_v57, %v847_v12 }
 0xb3a   : > { %v849_v14 = vpop.permute.xlu1 %848 }
 0xb3b   : > { %v2266_v15 = vadd.f32 %v1713_v62, %v849_v14 }
 0xb3d   : > { %v866_v17 = vrot.slane %v2266_v15, 7 }
 0xb3f   : > { %v867_v18 = vsel %vm443_vm10, %v866_v17, %v2268_v16 }
 0xb40   : > { %868 = vrot.lane.b32.xlu0 %v867_v18, %s1982_s26 }
 0xbb2   : > { %v869_v19 = vpop.permute.xlu0 %868 }
 0xbb3   : > { %1547 = vmatmul.msk.f32.vlgmr.msrb.gmra.mxu0 %vm344_vm1, %v869_v19 }
 0xc30   : > { %v889_v20 = vpop.f32.mrf.mxu0 }
 0xc31   : > { %v890_v21 = vadd.f32 %v2163_v6, %v889_v20 }
 0xc33   : > { %938 = vrot.lane.b32.xlu2 %v890_v21, %s1982_s26  ;;  %v893_v22 = vrot.slane %v890_v21, 1  ;;  %v896_v24 = vadd.f32 %v890_v21, %v864_v23 }
 0xc35   : > { %940 = vrot.lane.b32.xlu1 %v893_v22, %s1982_s26  ;;  %v898_v25 = vadd.f32 %v896_v24, %v2168_v10  ;;  %v897_v30 = vadd.f32 %v893_v22, %v865_v29 }
 0xc37   : > { %v1548_v26 = vmul.f32 -1.442695, %v898_v25  ;;  %v899_v31 = vadd.f32 %v897_v30, %v2172_v13  ;;  %v992_v30 = vld [vmem:[%s2139_s25 + $0x5] sm:$0x1] }
 0xc39   : > { %1714 = vpow2.f32 %v1548_v26  ;;  %v1549_v33 = vmul.f32 -1.442695, %v899_v31 }
 0xc3f   : > { %v1715_v27 = vpop.eup %1714 }
 0xc40   : > { %v906_v28 = vadd.f32 1.0, %v1715_v27 }
 0xc42   : > { %1716 = vrcp.f32 %v906_v28  ;;  %v919_v40 = vand.u32 2147483648, %v906_v28  ;;  %vm913_vm7 = vweird.f32 %v906_v28  ;;  %v917_v41 = vand.u32 2147483647, %v906_v28 }
 0xc43   : > { %1718 = vpow2.f32 %v1549_v33 }
 0xc44   : > { %v920_v43 = vor.u32 1.1754944e-38, %v919_v40  ;;  %vm918_vm9 = vcmp.eq.f32.partialorder %v917_v41, 8.507059e+37 }
 0xc48   : > { %v1717_v32 = vpop.eup %1716 }
 0xc49   : > { %v909_v34 = vmul.f32 %v1717_v32, %v906_v28  ;;  %v1719_v37 = vpop.eup %1718  ;;  %vm914_vm6 = vweird.f32 %v1717_v32 }
 0xc4a   : > { %v907_v39 = vadd.f32 1.0, %v1719_v37  ;;  %vm915_vm8 = vmor %vm913_vm7, %vm914_vm6 }
 0xc4b   : > { %v910_v35 = vsub.f32 1.0, %v909_v34 }
 0xc4c   : > { %1720 = vrcp.f32 %v907_v39  ;;  %v934_v52 = vand.u32 2147483648, %v907_v39  ;;  %vm928_vm12 = vweird.f32 %v907_v39  ;;  %v932_v53 = vand.u32 2147483647, %v907_v39 }
 0xc4d   : > { %v911_v36 = vmul.f32 %v1717_v32, %v910_v35 }
 0xc4e   : > { %v935_v55 = vor.u32 1.1754944e-38, %v934_v52  ;;  %vm933_vm14 = vcmp.eq.f32.partialorder %v932_v53, 8.507059e+37 }
 0xc4f   : > { %v912_v38 = vadd.f32 %v1717_v32, %v911_v36  ;;  %v993_v36 = vld [vmem:[%s2139_s25 + $0xd] sm:$0x1] }
 0xc51   : > { %v916_v42 = vsel %vm915_vm8, %v1717_v32, %v912_v38 }
 0xc52   : > { %v921_v45 = vsel %vm918_vm9, %v920_v43, %v916_v42  ;;  %v1721_v47 = vpop.eup %1720 }
 0xc53   : > { %v924_v48 = vmul.f32 %v1721_v47, %v907_v39  ;;  %vm929_vm11 = vweird.f32 %v1721_v47 }
 0xc54   : > { %vm930_vm13 = vmor %vm928_vm12, %vm929_vm11 }
 0xc55   : > { %v925_v49 = vsub.f32 1.0, %v924_v48 }
 0xc57   : > { %v926_v50 = vmul.f32 %v1721_v47, %v925_v49 }
 0xc59   : > { %v927_v51 = vadd.f32 %v1721_v47, %v926_v50 }
 0xc5b   : > { %v931_v54 = vsel %vm930_vm13, %v1721_v47, %v927_v51 }
 0xc5c   : > { %v936_v57 = vsel %vm933_vm14, %v935_v55, %v931_v54 }
 0xc8d   : > { %v939_v44 = vpop.permute.xlu2 %938 }
 0xc8e   : > { %v944_v46 = vmul.f32 %v939_v44, %v921_v45 }
 0xc90   : > { %948 = vrot.lane.b32.xlu1 %v944_v46, %s1982_s26 }
 0xca7   : > { %v941_v56 = vpop.permute.xlu1 %940 }
 0xca8   : > { %v945_v58 = vmul.f32 %v941_v56, %v936_v57 }
 0xcaa   : > { %950 = vrot.lane.b32.xlu0 %v945_v58, %s1982_s26 }
 0xd02   : > { %v949_v59 = vpop.permute.xlu1 %948 }
 0xd03   : > { %v954_v60 = vadd.f32 %v949_v59, %v864_v23 }
 0xd05   : > { %v956_v61 = vadd.f32 %v954_v60, %v2168_v10 }
 0xd07   : > { %1722 = vtanh.f32 %v956_v61 }
 0xd0d   : > { %v1723_v62 = vpop.eup %1722 }
 0xd0e   : > { %v960_v63 = vsub.f32 %v2268_v16, %v1723_v62 }
 0xd10   : > { %964 = vrot.lane.b32.xlu0 %v960_v63, %s1984_s29 }
 0xd1c   : > { %v951_v0 = vpop.permute.xlu0 %950 }
 0xd1d   : > { %v955_v1 = vadd.f32 %v951_v0, %v865_v29 }
 0xd1f   : > { %v957_v7 = vadd.f32 %v955_v1, %v2172_v13 }
 0xd21   : > { %1724 = vtanh.f32 %v957_v7 }
 0xd27   : > { %v1725_v11 = vpop.eup %1724 }
 0xd28   : > { %v961_v12 = vsub.f32 %v2266_v15, %v1725_v11 }
 0xd2a   : > { %966 = vrot.lane.b32.xlu2 %v961_v12, %s1984_s29 }
 0xd82   : > { %v965_v14 = vpop.permute.xlu0 %964 }
 0xd83   : > { %v970_v17 = vmul.f32 %v965_v14, %v921_v45 }
 0xd84   : > { %v967_v18 = vpop.permute.xlu2 %966 }
 0xd85   : > { %v971_v19 = vmul.f32 %v967_v18, %v936_v57  ;;  %974 = vrot.lane.b32.xlu2 %v970_v17, %s1983_s27 }
 0xd87   : > { %976 = vrot.lane.b32.xlu1 %v971_v19, %s1983_s27 }
 0xddf   : > { %v975_v20 = vpop.permute.xlu2 %974 }
 0xde0   : > { %v2294_v23 = vadd.f32 %v1723_v62, %v975_v20 }
 0xdf9   : > { %v977_v21 = vpop.permute.xlu1 %976 }
 0xdfa   : > { %v2292_v22 = vadd.f32 %v1725_v11, %v977_v21 }
 0xdfc   : > { %v994_v24 = vrot.slane %v2292_v22, 7 }
 0xdfe   : > { %v995_v25 = vsel %vm443_vm10, %v994_v24, %v2294_v23 }
 0xdff   : > { %996 = vrot.lane.b32.xlu0 %v995_v25, %s1982_s26 }
 0xe71   : > { %v997_v26 = vpop.permute.xlu0 %996 }
 0xe72   : > { %1550 = vmatmul.msk.f32.vlgmr.msrb.gmra.mxu1 %vm344_vm1, %v997_v26 }
 0xeef   : > { %v1017_v27 = vpop.f32.mrf.mxu1 }
 0xef0   : > { %v1018_v28 = vadd.f32 %v2163_v6, %v1017_v27 }
 0xef2   : > { %1066 = vrot.lane.b32.xlu2 %v1018_v28, %s1982_s26  ;;  %v1021_v29 = vrot.slane %v1018_v28, 1  ;;  %v1024_v31 = vadd.f32 %v1018_v28, %v992_v30 }
 0xef4   : > { %1068 = vrot.lane.b32.xlu1 %v1021_v29, %s1982_s26  ;;  %v1026_v32 = vadd.f32 %v1024_v31, %v2168_v10  ;;  %v1025_v37 = vadd.f32 %v1021_v29, %v993_v36 }
 0xef6   : > { %v1551_v33 = vmul.f32 -1.442695, %v1026_v32  ;;  %v1027_v38 = vadd.f32 %v1025_v37, %v2172_v13 }
 0xef8   : > { %1726 = vpow2.f32 %v1551_v33  ;;  %v1552_v6 = vmul.f32 -1.442695, %v1027_v38  ;;  %v1120_v38 = vld [vmem:[%s2139_s25 + $0x6] sm:$0x1] }
 0xefe   : > { %v1727_v34 = vpop.eup %1726 }
 0xeff   : > { %v1034_v35 = vadd.f32 1.0, %v1727_v34 }
 0xf01   : > { %1728 = vrcp.f32 %v1034_v35  ;;  %v1047_v46 = vand.u32 2147483648, %v1034_v35  ;;  %vm1041_vm0 = vweird.f32 %v1034_v35  ;;  %v1045_v47 = vand.u32 2147483647, %v1034_v35 }
 0xf02   : > { %1730 = vpow2.f32 %v1552_v6  ;;  %v2336_v6 = vld [vmem:[#allocation6] sm:$0x3] }
 0xf03   : > { %v1048_v49 = vor.u32 1.1754944e-38, %v1047_v46  ;;  %vm1046_vm3 = vcmp.eq.f32.partialorder %v1045_v47, 8.507059e+37 }
 0xf07   : > { %v1729_v39 = vpop.eup %1728 }
 0xf08   : > { %v1037_v40 = vmul.f32 %v1729_v39, %v1034_v35  ;;  %v1731_v43 = vpop.eup %1730  ;;  %vm1042_vm15 = vweird.f32 %v1729_v39  ;;  %v2330_v35 = vld [vmem:[%s2485_s4] ss:$0 sm:$0xff] }
 0xf09   : > { %v1035_v45 = vadd.f32 1.0, %v1731_v43  ;;  %vm1043_vm2 = vmor %vm1041_vm0, %vm1042_vm15 }
 0xf0a   : > { %v1038_v41 = vsub.f32 1.0, %v1037_v40 }
 0xf0b   : > { %1732 = vrcp.f32 %v1035_v45  ;;  %v1062_v58 = vand.u32 2147483648, %v1035_v45  ;;  %vm1056_vm5 = vweird.f32 %v1035_v45  ;;  %v1060_v59 = vand.u32 2147483647, %v1035_v45 }
 0xf0c   : > { %v1039_v42 = vmul.f32 %v1729_v39, %v1038_v41 }
 0xf0d   : > { %v1063_v61 = vor.u32 1.1754944e-38, %v1062_v58  ;;  %vm1061_vm7 = vcmp.eq.f32.partialorder %v1060_v59, 8.507059e+37 }
 0xf0e   : > { %v1040_v44 = vadd.f32 %v1729_v39, %v1039_v42 }
 0xf10   : > { %v1044_v48 = vsel %vm1043_vm2, %v1729_v39, %v1040_v44  ;;  %v1121_v44 = vld [vmem:[%s2139_s25 + $0xe] sm:$0x1] }
 0xf11   : > { %v1049_v51 = vsel %vm1046_vm3, %v1048_v49, %v1044_v48  ;;  %v1733_v53 = vpop.eup %1732 }
 0xf12   : > { %v1052_v54 = vmul.f32 %v1733_v53, %v1035_v45  ;;  %vm1057_vm4 = vweird.f32 %v1733_v53 }
 0xf13   : > { %vm1058_vm6 = vmor %vm1056_vm5, %vm1057_vm4 }
 0xf14   : > { %v1053_v55 = vsub.f32 1.0, %v1052_v54 }
 0xf16   : > { %v1054_v56 = vmul.f32 %v1733_v53, %v1053_v55 }
 0xf18   : > { %v1055_v57 = vadd.f32 %v1733_v53, %v1054_v56 }
 0xf1a   : > { %v1059_v60 = vsel %vm1058_vm6, %v1733_v53, %v1055_v57 }
 0xf1b   : > { %v1064_v63 = vsel %vm1061_vm7, %v1063_v61, %v1059_v60 }
 0xf4c   : > { %v1067_v50 = vpop.permute.xlu2 %1066 }
 0xf4d   : > { %v1072_v52 = vmul.f32 %v1067_v50, %v1049_v51 }
 0xf4f   : > { %1076 = vrot.lane.b32.xlu1 %v1072_v52, %s1982_s26 }
 0xf66   : > { %v1069_v62 = vpop.permute.xlu1 %1068 }
 0xf67   : > { %v1073_v0 = vmul.f32 %v1069_v62, %v1064_v63 }
 0xf69   : > { %1078 = vrot.lane.b32.xlu0 %v1073_v0, %s1982_s26 }
 0xfc1   : > { %v1077_v1 = vpop.permute.xlu1 %1076 }
 0xfc2   : > { %v1082_v7 = vadd.f32 %v1077_v1, %v992_v30 }
 0xfc4   : > { %v1084_v11 = vadd.f32 %v1082_v7, %v2168_v10 }
 0xfc6   : > { %1734 = vtanh.f32 %v1084_v11 }
 0xfcc   : > { %v1735_v12 = vpop.eup %1734 }
 0xfcd   : > { %v1088_v14 = vsub.f32 %v2294_v23, %v1735_v12 }
 0xfcf   : > { %1092 = vrot.lane.b32.xlu0 %v1088_v14, %s1984_s29 }
 0xfdb   : > { %v1079_v17 = vpop.permute.xlu0 %1078 }
 0xfdc   : > { %v1083_v18 = vadd.f32 %v1079_v17, %v993_v36 }
 0xfde   : > { %v1085_v19 = vadd.f32 %v1083_v18, %v2172_v13 }
 0xfe0   : > { %1736 = vtanh.f32 %v1085_v19 }
 0xfe6   : > { %v1737_v20 = vpop.eup %1736 }
 0xfe7   : > { %v1089_v21 = vsub.f32 %v2292_v22, %v1737_v20 }
 0xfe9   : > { %1094 = vrot.lane.b32.xlu2 %v1089_v21, %s1984_s29 }
0x1041   : > { %v1093_v24 = vpop.permute.xlu0 %1092 }
0x1042   : > { %v1098_v25 = vmul.f32 %v1093_v24, %v1049_v51 }
0x1043   : > { %v1095_v26 = vpop.permute.xlu2 %1094 }
0x1044   : > { %v1099_v10 = vmul.f32 %v1095_v26, %v1064_v63  ;;  %1102 = vrot.lane.b32.xlu2 %v1098_v25, %s1983_s27 }
0x1046   : > { %1104 = vrot.lane.b32.xlu1 %v1099_v10, %s1983_s27 }
0x109e   : > { %v1103_v27 = vpop.permute.xlu2 %1102 }
0x109f   : > { %v2320_v30 = vadd.f32 %v1735_v12, %v1103_v27 }
0x10b8   : > { %v1105_v28 = vpop.permute.xlu1 %1104 }
0x10b9   : > { %v2318_v29 = vadd.f32 %v1737_v20, %v1105_v28 }
0x10bb   : > { %v1122_v31 = vrot.slane %v2318_v29, 7 }
0x10bd   : > { %v1123_v32 = vsel %vm443_vm10, %v1122_v31, %v2320_v30 }
0x10be   : > { %1124 = vrot.lane.b32.xlu0 %v1123_v32, %s1982_s26 }
0x1130   : > { %v1125_v33 = vpop.permute.xlu0 %1124 }
0x1131   : > { %1553 = vmatmul.msk.f32.vlgmr.msrb.gmra.mxu2 %vm344_vm1, %v1125_v33 }
0x11b4   : > { %v1145_v34 = vpop.f32.mrf.mxu2 }
0x11b5   : > { %v1146_v36 = vadd.f32 %v2330_v35, %v1145_v34 }
0x11b7   : > { %1194 = vrot.lane.b32.xlu2 %v1146_v36, %s1982_s26  ;;  %v1149_v37 = vrot.slane %v1146_v36, 1  ;;  %v1152_v39 = vadd.f32 %v1146_v36, %v1120_v38 }
0x11b9   : > { %1196 = vrot.lane.b32.xlu1 %v1149_v37, %s1982_s26  ;;  %v1154_v40 = vadd.f32 %v2336_v6, %v1152_v39  ;;  %v1153_v45 = vadd.f32 %v1149_v37, %v1121_v44 }
0x11bb   : > { %v1554_v41 = vmul.f32 -1.442695, %v1154_v40  ;;  %v1155_v46 = vadd.f32 %v1153_v45, %v2172_v13 }
0x11bd   : > { %1738 = vpow2.f32 %v1554_v41  ;;  %v1555_v48 = vmul.f32 -1.442695, %v1155_v46 }
0x11c3   : > { %v1739_v42 = vpop.eup %1738 }
0x11c4   : > { %v1162_v43 = vadd.f32 1.0, %v1739_v42 }
0x11c6   : > { %1740 = vrcp.f32 %v1162_v43  ;;  %v1175_v55 = vand.u32 2147483648, %v1162_v43  ;;  %vm1169_vm9 = vweird.f32 %v1162_v43  ;;  %v1173_v56 = vand.u32 2147483647, %v1162_v43 }
0x11c7   : > { %1742 = vpow2.f32 %v1555_v48 }
0x11c8   : > { %v1176_v58 = vor.u32 1.1754944e-38, %v1175_v55  ;;  %vm1174_vm12 = vcmp.eq.f32.partialorder %v1173_v56, 8.507059e+37  ;;  %v1249_v55 = vld [vmem:[%s2139_s25 + $0xf] sm:$0x1] }
0x11cc   : > { %v1741_v47 = vpop.eup %1740 }
0x11cd   : > { %v1165_v49 = vmul.f32 %v1741_v47, %v1162_v43  ;;  %v1743_v52 = vpop.eup %1742  ;;  %vm1170_vm8 = vweird.f32 %v1741_v47 }
0x11ce   : > { %v1163_v54 = vadd.f32 1.0, %v1743_v52  ;;  %vm1171_vm11 = vmor %vm1169_vm9, %vm1170_vm8  ;;  %vm477_vm9 = vcmask 253952  }
0x11cf   : > { %v1166_v50 = vsub.f32 1.0, %v1165_v49  ;;  %v1248_v49 = vld [vmem:[%s2139_s25 + $0x7] sm:$0x1] }
0x11d0   : > { %1744 = vrcp.f32 %v1163_v54  ;;  %v1190_v11 = vand.u32 2147483648, %v1163_v54  ;;  %vm1184_vm14 = vweird.f32 %v1163_v54  ;;  %v1188_v12 = vand.u32 2147483647, %v1163_v54 }
0x11d1   : > { %v1167_v51 = vmul.f32 %v1741_v47, %v1166_v50 }
0x11d2   : > { %v1191_v17 = vor.u32 1.1754944e-38, %v1190_v11  ;;  %vm1189_vm0 = vcmp.eq.f32.partialorder %v1188_v12, 8.507059e+37 }
0x11d3   : > { %v1168_v53 = vadd.f32 %v1741_v47, %v1167_v51 }
0x11d5   : > { %v1172_v57 = vsel %vm1171_vm11, %v1741_v47, %v1168_v53 }
0x11d6   : > { %v1177_v60 = vsel %vm1174_vm12, %v1176_v58, %v1172_v57  ;;  %v1745_v62 = vpop.eup %1744 }
0x11d7   : > { %v1180_v63 = vmul.f32 %v1745_v62, %v1163_v54  ;;  %vm1185_vm13 = vweird.f32 %v1745_v62 }
0x11d8   : > { %vm1186_vm15 = vmor %vm1184_vm14, %vm1185_vm13 }
0x11d9   : > { %v1181_v0 = vsub.f32 1.0, %v1180_v63 }
0x11db   : > { %v1182_v1 = vmul.f32 %v1745_v62, %v1181_v0 }
0x11dd   : > { %v1183_v7 = vadd.f32 %v1745_v62, %v1182_v1 }
0x11df   : > { %v1187_v14 = vsel %vm1186_vm15, %v1745_v62, %v1183_v7 }
0x11e0   : > { %v1192_v19 = vsel %vm1189_vm0, %v1191_v17, %v1187_v14 }
0x1211   : > { %v1195_v59 = vpop.permute.xlu2 %1194 }
0x1212   : > { %v1200_v61 = vmul.f32 %v1195_v59, %v1177_v60 }
0x1214   : > { %1204 = vrot.lane.b32.xlu1 %v1200_v61, %s1982_s26 }
0x122b   : > { %v1197_v18 = vpop.permute.xlu1 %1196 }
0x122c   : > { %v1201_v20 = vmul.f32 %v1197_v18, %v1192_v19 }
0x122e   : > { %1206 = vrot.lane.b32.xlu0 %v1201_v20, %s1982_s26 }
0x1286   : > { %v1205_v21 = vpop.permute.xlu1 %1204 }
0x1287   : > { %v1210_v24 = vadd.f32 %v1205_v21, %v1120_v38 }
0x1289   : > { %v1212_v25 = vadd.f32 %v2336_v6, %v1210_v24 }
0x128b   : > { %1746 = vtanh.f32 %v1212_v25 }
0x1291   : > { %v1747_v26 = vpop.eup %1746 }
0x1292   : > { %v1216_v10 = vsub.f32 %v2320_v30, %v1747_v26 }
0x1294   : > { %1220 = vrot.lane.b32.xlu0 %v1216_v10, %s1984_s29 }
0x12a0   : > { %v1207_v27 = vpop.permute.xlu0 %1206 }
0x12a1   : > { %v1211_v28 = vadd.f32 %v1207_v27, %v1121_v44 }
0x12a3   : > { %v1213_v31 = vadd.f32 %v1211_v28, %v2172_v13 }
0x12a5   : > { %1748 = vtanh.f32 %v1213_v31 }
0x12ab   : > { %v1749_v32 = vpop.eup %1748 }
0x12ac   : > { %v1217_v33 = vsub.f32 %v2318_v29, %v1749_v32 }
0x12ae   : > { %1222 = vrot.lane.b32.xlu2 %v1217_v33, %s1984_s29 }
0x1306   : > { %v1221_v34 = vpop.permute.xlu0 %1220 }
0x1307   : > { %v1226_v36 = vmul.f32 %v1221_v34, %v1177_v60 }
0x1308   : > { %v1223_v37 = vpop.permute.xlu2 %1222 }
0x1309   : > { %v1227_v38 = vmul.f32 %v1223_v37, %v1192_v19  ;;  %1230 = vrot.lane.b32.xlu2 %v1226_v36, %s1983_s27 }
0x130b   : > { %1232 = vrot.lane.b32.xlu1 %v1227_v38, %s1983_s27 }
0x1363   : > { %v1231_v39 = vpop.permute.xlu2 %1230 }
0x1364   : > { %v2353_v42 = vadd.f32 %v1747_v26, %v1231_v39 }
0x137d   : > { %v1233_v40 = vpop.permute.xlu1 %1232 }
0x137e   : > { %v2351_v41 = vadd.f32 %v1749_v32, %v1233_v40 }
0x1380   : > { %v1250_v43 = vrot.slane %v2351_v41, 7 }
0x1382   : > { %v1251_v44 = vsel %vm443_vm10, %v1250_v43, %v2353_v42 }
0x1383   : > { %1252 = vrot.lane.b32.xlu0 %v1251_v44, %s1982_s26 }
0x13f5   : > { %v1253_v45 = vpop.permute.xlu0 %1252 }
0x13f6   : > { %1556 = vmatmul.msk.f32.vlgmr.msrb.gmra.mxu3 %vm344_vm1, %v1253_v45 }
0x1479   : > { %v1273_v46 = vpop.f32.mrf.mxu3 }
0x147a   : > { %v1274_v47 = vadd.f32 %v2330_v35, %v1273_v46 }
0x147c   : > { %1322 = vrot.lane.b32.xlu2 %v1274_v47, %s1982_s26  ;;  %v1277_v48 = vrot.slane %v1274_v47, 1  ;;  %v1280_v50 = vadd.f32 %v1274_v47, %v1248_v49 }
0x147e   : > { %1324 = vrot.lane.b32.xlu1 %v1277_v48, %s1982_s26  ;;  %v1282_v51 = vadd.f32 %v2336_v6, %v1280_v50  ;;  %v1281_v56 = vadd.f32 %v1277_v48, %v1249_v55 }
0x1480   : > { %v1557_v52 = vmul.f32 -1.442695, %v1282_v51  ;;  %v1283_v57 = vadd.f32 %v1281_v56, %v2172_v13 }
0x1482   : > { %1750 = vpow2.f32 %v1557_v52  ;;  %v1558_v35 = vmul.f32 -1.442695, %v1283_v57 }
0x1488   : > { %v1751_v53 = vpop.eup %1750 }
0x1489   : > { %v1290_v54 = vadd.f32 1.0, %v1751_v53 }
0x148b   : > { %1752 = vrcp.f32 %v1290_v54  ;;  %v1303_v1 = vand.u32 2147483648, %v1290_v54  ;;  %vm1297_vm2 = vweird.f32 %v1290_v54  ;;  %v1301_v7 = vand.u32 2147483647, %v1290_v54 }
0x148c   : > { %1754 = vpow2.f32 %v1558_v35 }
0x148d   : > { %v1304_v12 = vor.u32 1.1754944e-38, %v1303_v1  ;;  %vm1302_vm4 = vcmp.eq.f32.partialorder %v1301_v7, 8.507059e+37 }
0x1491   : > { %v1753_v58 = vpop.eup %1752 }
0x1492   : > { %v1293_v59 = vmul.f32 %v1753_v58, %v1290_v54  ;;  %v1755_v62 = vpop.eup %1754  ;;  %vm1298_vm1 = vweird.f32 %v1753_v58 }
0x1493   : > { %v1291_v0 = vadd.f32 1.0, %v1755_v62  ;;  %vm1299_vm3 = vmor %vm1297_vm2, %vm1298_vm1 }
0x1494   : > { %v1294_v60 = vsub.f32 1.0, %v1293_v59 }
0x1495   : > { %1756 = vrcp.f32 %v1291_v0  ;;  %v1318_v26 = vand.u32 2147483648, %v1291_v0  ;;  %vm1312_vm6 = vweird.f32 %v1291_v0  ;;  %v1316_v10 = vand.u32 2147483647, %v1291_v0 }
0x1496   : > { %v1295_v61 = vmul.f32 %v1753_v58, %v1294_v60 }
0x1497   : > { %v1319_v28 = vor.u32 1.1754944e-38, %v1318_v26  ;;  %vm1317_vm8 = vcmp.eq.f32.partialorder %v1316_v10, 8.507059e+37 }
0x1498   : > { %v1296_v63 = vadd.f32 %v1753_v58, %v1295_v61 }
0x149a   : > { %v1300_v11 = vsel %vm1299_vm3, %v1753_v58, %v1296_v63 }
0x149b   : > { %v1305_v17 = vsel %vm1302_vm4, %v1304_v12, %v1300_v11  ;;  %v1757_v19 = vpop.eup %1756 }
0x149c   : > { %v1308_v20 = vmul.f32 %v1757_v19, %v1291_v0  ;;  %vm1313_vm5 = vweird.f32 %v1757_v19 }
0x149d   : > { %vm1314_vm7 = vmor %vm1312_vm6, %vm1313_vm5 }
0x149e   : > { %v1309_v21 = vsub.f32 1.0, %v1308_v20 }
0x14a0   : > { %v1310_v24 = vmul.f32 %v1757_v19, %v1309_v21 }
0x14a2   : > { %v1311_v25 = vadd.f32 %v1757_v19, %v1310_v24 }
0x14a4   : > { %v1315_v27 = vsel %vm1314_vm7, %v1757_v19, %v1311_v25 }
0x14a5   : > { %v1320_v32 = vsel %vm1317_vm8, %v1319_v28, %v1315_v27 }
0x14d6   : > { %v1323_v14 = vpop.permute.xlu2 %1322 }
0x14d7   : > { %v1328_v18 = vmul.f32 %v1323_v14, %v1305_v17 }
0x14d9   : > { %1332 = vrot.lane.b32.xlu1 %v1328_v18, %s1982_s26 }
0x14f0   : > { %v1325_v31 = vpop.permute.xlu1 %1324 }
0x14f1   : > { %v1329_v33 = vmul.f32 %v1325_v31, %v1320_v32 }
0x14f3   : > { %1334 = vrot.lane.b32.xlu0 %v1329_v33, %s1982_s26 }
0x154b   : > { %v1333_v34 = vpop.permute.xlu1 %1332 }
0x154c   : > { %v1338_v36 = vadd.f32 %v1333_v34, %v1248_v49 }
0x154e   : > { %v1340_v37 = vadd.f32 %v2336_v6, %v1338_v36 }
0x1550   : > { %1758 = vtanh.f32 %v1340_v37 }
0x1556   : > { %v1759_v38 = vpop.eup %1758 }
0x1557   : > { %v1344_v39 = vsub.f32 %v2353_v42, %v1759_v38 }
0x1559   : > { %1348 = vrot.lane.b32.xlu0 %v1344_v39, %s1984_s29 }
0x1561   : > { %471 = vrot.lane.b32.xlu0 %v2190_v4, %s1982_s26 }
0x1565   : > { %v1335_v40 = vpop.permute.xlu0 %1334 }
0x1566   : > { %v1339_v43 = vadd.f32 %v1335_v40, %v1249_v55 }
0x1568   : > { %v1341_v44 = vadd.f32 %v1339_v43, %v2172_v13 }
0x1569   : > { %602 = vrot.lane.b32.xlu0 %v2214_v2, %s1982_s26 }
0x156a   : > { %1760 = vtanh.f32 %v1341_v44 }
0x1570   : > { %v1761_v45 = vpop.eup %1760 }
0x1571   : > { %856 = vrot.lane.b32.xlu0 %v2268_v16, %s1982_s26  ;;  %v1345_v6 = vsub.f32 %v2351_v41, %v1761_v45 }
0x1573   : > { %1350 = vrot.lane.b32.xlu2 %v1345_v6, %s1984_s29 }
0x1579   : > { %986 = vrot.lane.b32.xlu0 %v2292_v22, %s1982_s26 }
0x1581   : > { %1240 = vrot.lane.b32.xlu0 %v2353_v42, %s1982_s26 }
0x15cb   : > { %v1349_v13 = vpop.permute.xlu0 %1348 }
0x15cc   : > { %v1354_v4 = vmul.f32 %v1349_v13, %v1305_v17 }
0x15cd   : > { %v1351_v2 = vpop.permute.xlu2 %1350 }
0x15ce   : > { %v1355_v46 = vmul.f32 %v1351_v2, %v1320_v32  ;;  %1358 = vrot.lane.b32.xlu2 %v1354_v4, %s1983_s27 }
0x15d0   : > { %1360 = vrot.lane.b32.xlu1 %v1355_v46, %s1983_s27 }
0x15d3   : > { %v472_v16 = vpop.permute.xlu0 %471 }
0x15d4   : > { %478 = vst.msk [vmem:[%s2153_s1] sm:$0x1] %vm477_vm9, %v472_v16 }
0x15d6   : > { %600 = vrot.lane.b32.xlu2 %v2216_v5, %s1982_s26 }
0x15d8   : > { %473 = vrot.lane.b32.xlu1 %v2188_v3, %s1982_s26 }
0x15db   : > { %v603_v22 = vpop.permute.xlu0 %602 }
0x15dc   : > { %607 = vst.msk [vmem:[%s2153_s1 + $0x9] sm:$0x1] %vm477_vm9, %v603_v22 }
0x15de   : > { %730 = vrot.lane.b32.xlu2 %v2240_v8, %s1982_s26 }
0x15e0   : > { %728 = vrot.lane.b32.xlu1 %v2242_v9, %s1982_s26 }
0x15e3   : > { %v857_v42 = vpop.permute.xlu0 %856 }
0x15e4   : > { %862 = vst.msk [vmem:[%s2153_s1 + $0x3] sm:$0x1] %vm477_vm9, %v857_v42 }
0x15e6   : > { %984 = vrot.lane.b32.xlu2 %v2294_v23, %s1982_s26 }
0x15e8   : > { %858 = vrot.lane.b32.xlu1 %v2266_v15, %s1982_s26 }
0x15eb   : > { %v987_v3 = vpop.permute.xlu0 %986 }
0x15ec   : > { %991 = vst.msk [vmem:[%s2153_s1 + $0xc] sm:$0x1] %vm477_vm9, %v987_v3 }
0x15ee   : > { %1114 = vrot.lane.b32.xlu2 %v2318_v29, %s1982_s26 }
0x15f0   : > { %1112 = vrot.lane.b32.xlu1 %v2320_v30, %s1982_s26 }
0x15f3   : > { %v1241_v5 = vpop.permute.xlu0 %1240 }
0x15f4   : > { %1246 = vst.msk [vmem:[%s2153_s1 + $0x6] sm:$0x1] %vm477_vm9, %v1241_v5 }
0x15f8   : > { %1242 = vrot.lane.b32.xlu1 %v2351_v41, %s1982_s26 }
0x1628   : > { %v1359_v8 = vpop.permute.xlu2 %1358 }
0x1629   : > { %v1364_v9 = vadd.f32 %v1759_v38, %v1359_v8 }
0x162b   : > { %1368 = vrot.lane.b32.xlu2 %v1364_v9, %s1982_s26 }
0x1630   : > { %v601_v15 = vpop.permute.xlu2 %600 }
0x1631   : > { %606 = vst.msk [vmem:[%s2153_s1 + $0x1] sm:$0x1] %vm477_vm9, %v601_v15 }
0x1638   : > { %v731_v23 = vpop.permute.xlu2 %730 }
0x1639   : > { %735 = vst.msk [vmem:[%s2153_s1 + $0xa] sm:$0x1] %vm477_vm9, %v731_v23 }
0x1640   : > { %v985_v29 = vpop.permute.xlu2 %984 }
0x1641   : > { %990 = vst.msk [vmem:[%s2153_s1 + $0x4] sm:$0x1] %vm477_vm9, %v985_v29 }
0x1642   : > { %v1361_v30 = vpop.permute.xlu1 %1360 }
0x1643   : > { %v1365_v41 = vadd.f32 %v1761_v45, %v1361_v30 }
0x1645   : > { %v1376_v47 = vrot.slane %v1365_v41, 7  ;;  %1370 = vrot.lane.b32.xlu0 %v1365_v41, %s1982_s26 }
0x1647   : > { %v1377_v48 = vsel %vm443_vm10, %v1376_v47, %v1364_v9  ;;  %vm1381_vm10 = vcmask 254976  }
0x1648   : > { %1378 = vrot.lane.b32.xlu1 %v1377_v48, %s1982_s26  ;;  %v1115_v49 = vpop.permute.xlu2 %1114 }
0x1649   : > { %1119 = vst.msk [vmem:[%s2153_s1 + $0xd] sm:$0x1] %vm477_vm9, %v1115_v49 }
0x164a   : > { %v474_v50 = vpop.permute.xlu1 %473 }
0x164b   : > { %479 = vst.msk [vmem:[%s2153_s1 + $0x8] sm:$0x1] %vm477_vm9, %v474_v50 }
0x1652   : > { %v729_v51 = vpop.permute.xlu1 %728 }
0x1653   : > { %734 = vst.msk [vmem:[%s2153_s1 + $0x2] sm:$0x1] %vm477_vm9, %v729_v51 }
0x165a   : > { %v859_v52 = vpop.permute.xlu1 %858 }
0x165b   : > { %863 = vst.msk [vmem:[%s2153_s1 + $0xb] sm:$0x1] %vm477_vm9, %v859_v52 }
0x1662   : > { %v1113_v53 = vpop.permute.xlu1 %1112 }
0x1663   : > { %1118 = vst.msk [vmem:[%s2153_s1 + $0x5] sm:$0x1] %vm477_vm9, %v1113_v53 }
0x166a   : > { %v1243_v54 = vpop.permute.xlu1 %1242 }
0x166b   : > { %1247 = vst.msk [vmem:[%s2153_s1 + $0xe] sm:$0x1] %vm477_vm9, %v1243_v54 }
0x1685   : > { %v1369_v55 = vpop.permute.xlu2 %1368 }
0x1686   : > { %1374 = vst.msk [vmem:[%s2153_s1 + $0x7] sm:$0x1] %vm477_vm9, %v1369_v55 }
0x16b7   : > { %v1371_v56 = vpop.permute.xlu0 %1370 }
0x16b8   : > { %1375 = vst.msk [vmem:[%s2153_s1 + $0xf] sm:$0x1] %vm477_vm9, %v1371_v56 }
0x16b9   : > { %1911 = shalt.err (!%p1908_p2)
}
0x16ba   : > { %s1985_s15 = smov 128   ;;  %s1986_s1 = smov 256   ;;  %v1379_v57 = vpop.permute.xlu1 %1378 }
0x16bb   : > { %s1987_s27 = smov 8   ;;  %1382 = vst.msk [vmem:[#allocation2] sm:$0x3] %vm1381_vm10, %v1379_v57 }
0x16bc   : > { %1577 = dma.vmem_to_hbm [thread:$0]  (%p2070_p8), %s1399_s28, 256, %s1401_s16, %s1384_s11, %s1985_s15, %s1986_s1, %s1987_s27  }
0x16bd PF: > { %s2505_s29 = sld [smem:[#allocation16_spill]]  ;;  %s1415_s10 = sand.u32 1, %s1954_s18  }
0x16be   : > { %p1594_p4 = pnand %p1525_p13, %p2074_p9  ;;  %s1416_s17 = scalar_lea.sflag [#allocation5], %s1415_s10 }
0x16c0   : > { %p1595_p5 = pneg %p1594_p4 }
0x16c2   : > { %1949 = dma.done.wait (%p1595_p5), %s1416_s17, 256  }
0x16c3   : > { %1951 = vsyncadd (%p1595_p5), %s1416_s17, 4294967040  ;;  %s23_s23 = sadd.s32 1, %s2505_s29   ;;  %s2506_s18 = smov %s1958_s19 }
0x16c4   : > { %p20_p6 = scmp.ge.s32.totalorder %s23_s23, 4   ;;  %s2507_s19 = smov %s1962_s20 }
0x16c5   : > { %s2508_s20 = smov %s2128_s13  ;;  %s2509_s21 = smov %s1970_s22 }
0x16c6   : > { %s2510_s22 = smov %s2512_s9  ;;  %22 = sbr.rel (!%p20_p6) target bundleno = 12 (0xc), region = 103 }
0x16cb   :  { %1422 = vsyncpa [#allocation4], 1 }
0x16cc   :  { %1424 = vsyncpa [#allocation4 + $0x1], 1 }
0x16cd   :  { %1425 = vsyncpa [#allocation7], 1 }
0x16ce   :  { %1426 = vsyncpa [#allocation10], 1 }
0x16cf   :  { %1427 = vsyncpa [#allocation5], 1 }
0x16d0   :  { %1429 = vsyncpa [#allocation5 + $0x1], 1 }

</bundles_post_ra>
